<compile_context>
chip_gen: v6e
topology: v6e:2x2x1
jax: 0.10.0
libtpu: 0.0.40
codegen_flags: <defaults>
</compile_context>

<pallas_src>
import jax
import jax.numpy as jnp
from jax.experimental import pallas as pl
from jax.experimental.pallas import tpu as pltpu

HIDDEN = 80  # fixed by the module: Linear(4*D, 80) -> ReLU -> Linear(80, 1)


def interest_extractor_kernel(cand_ref, seq_ref, wc_ref, ws_ref, wp_ref,
                              b1_ref, w2_ref, out_ref):
    # cand_ref: (bb, D)      candidate embeddings for this batch block
    # seq_ref : (bb, K, D)   behaviour sub-sequences
    # wc_ref  : (D, H) = W1[:D]   + W1[2D:3D]   (candidate + diff term, fused)
    # ws_ref  : (D, H) = W1[D:2D] - W1[2D:3D]   (sequence  - diff term, fused)
    # wp_ref  : (D, H) = W1[3D:4D]              (product term)
    # b1_ref  : (1, H)
    # w2_ref  : (1, H)       second Linear as a row vector
    # out_ref : (bb, D)
    cand = cand_ref[...]                       # (bb, D)
    seq = seq_ref[...]                         # (bb, K, D)
    bb, K, D = seq.shape
    H = b1_ref.shape[-1]

    prod = seq * cand[:, None, :]              # (bb, K, D)  candidate*behavior

    # First Linear (fused W1): one big (bb*K, D) x (D, H) matmul per term,
    # plus a tiny (bb, D) x (D, H) matmul for the K-invariant candidate term.
    seq2 = seq.reshape(bb * K, D)
    prod2 = prod.reshape(bb * K, D)
    h2 = (jnp.dot(seq2, ws_ref[...], preferred_element_type=jnp.float32) +
          jnp.dot(prod2, wp_ref[...], preferred_element_type=jnp.float32))
    h = h2.reshape(bb, K, H)
    h = h + jnp.dot(cand, wc_ref[...],
                    preferred_element_type=jnp.float32)[:, None, :]
    h = jnp.maximum(h + b1_ref[...], 0.0)      # (bb, K, H)  ReLU

    # Second Linear (output width 1): VPU multiply + lane reduction instead of
    # an N=1 MXU matmul.  (b2 is omitted — softmax shift invariance.)
    s = jnp.sum(h * w2_ref[...], axis=-1)      # (bb, K) logits, K on lanes

    # Softmax over K as lane reductions, once per batch block.
    m = jnp.max(s, axis=-1, keepdims=True)     # (bb, 1)
    p = jnp.exp(s - m)                         # (bb, K)
    w = p / jnp.sum(p, axis=-1, keepdims=True)

    # Weighted sum over the sub-sequence: batched (1,K)x(K,D) contraction.
    w3 = w.reshape(bb, 1, K)                   # minor-dim-preserving reshape
    out3 = jnp.einsum('bqk,bkd->bqd', w3, seq,
                      preferred_element_type=jnp.float32)   # (bb, 1, D)
    out_ref[...] = out3.reshape(bb, D).astype(out_ref.dtype)


def interest_extractor(candidate_emb, user_behavior_subseq, w1, b1, w2, b2):
    """Pallas forward of InterestExtractor.

    candidate_emb:        (B, D)
    user_behavior_subseq: (B, K, D)
    w1: (4D, H), b1: (1, H), w2: (H, 1), b2: (1, 1)
    """
    del b2  # pre-softmax scalar bias is a mathematical no-op (shift invariance)
    B, D = candidate_emb.shape
    _, K, _ = user_behavior_subseq.shape
    H = w1.shape[1]

    # Fuse W1 so att_in = concat([cand, seq, cand-seq, cand*seq]) @ W1 becomes
    #   cand@(W1a+W1c) + seq@(W1b-W1c) + (cand*seq)@W1d   (no in-kernel concat)
    w_cand = w1[:D] + w1[2 * D:3 * D]          # (D, H)
    w_seq = w1[D:2 * D] - w1[2 * D:3 * D]      # (D, H)
    w_prod = w1[3 * D:]                        # (D, H)
    w2_row = w2.reshape(1, H)                  # (1, H)

    # Batch blocking: two parallel steps (both v7x TensorCores busy) when the
    # batch splits cleanly into sublane-aligned halves, otherwise one step.
    # VMEM footprint here is < 1 MiB; for production shapes keep
    # 2*block_b*K*D*4B (+ weights) under the scoped VMEM limit.
    if B % 16 == 0:
        block_b = B // 2
    else:
        block_b = B
    grid = (B // block_b,)

    out = pl.pallas_call(
        interest_extractor_kernel,
        out_shape=jax.ShapeDtypeStruct((B, D), candidate_emb.dtype),
        grid_spec=pltpu.PrefetchScalarGridSpec(
            num_scalar_prefetch=0,
            grid=grid,
            in_specs=[
                pl.BlockSpec((block_b, D), lambda b: (b, 0)),        # candidate
                pl.BlockSpec((block_b, K, D), lambda b: (b, 0, 0)),  # sub-seq
                pl.BlockSpec((D, H), lambda b: (0, 0)),              # W_cand
                pl.BlockSpec((D, H), lambda b: (0, 0)),              # W_seq
                pl.BlockSpec((D, H), lambda b: (0, 0)),              # W_prod
                pl.BlockSpec((1, H), lambda b: (0, 0)),              # b1
                pl.BlockSpec((1, H), lambda b: (0, 0)),              # w2 row
            ],
            out_specs=pl.BlockSpec((block_b, D), lambda b: (b, 0)),
        ),
        compiler_params=pltpu.CompilerParams(
            dimension_semantics=("parallel",)),
    )(candidate_emb, user_behavior_subseq, w_cand, w_seq, w_prod, b1, w2_row)
    return out


def reference(candidate_emb, user_behavior_subseq, w1, b1, w2, b2):
    """Plain-JAX re-implementation of the PyTorch forward pass (with b2)."""
    cand_e = jnp.broadcast_to(candidate_emb[:, None, :],
                              user_behavior_subseq.shape)
    att_in = jnp.concatenate(
        [cand_e, user_behavior_subseq,
         cand_e - user_behavior_subseq,
         cand_e * user_behavior_subseq], axis=-1)
    h = jnp.maximum(att_in @ w1 + b1[0], 0.0)
    s = (h @ w2)[..., 0] + b2[0, 0]
    w = jax.nn.softmax(s, axis=-1)
    return jnp.sum(w[..., None] * user_behavior_subseq, axis=1)


if __name__ == "__main__":
    B, K, D = 16, 16, 32   # small shapes consistent with (batch, k, embedding_dim)

    key = jax.random.PRNGKey(0)
    kc, ks, k1, k2, k3, k4 = jax.random.split(key, 6)

    candidate_emb = jax.random.normal(kc, (B, D), dtype=jnp.float32)
    user_behavior_subseq = jax.random.normal(ks, (B, K, D), dtype=jnp.float32)

    # Shapes from nn.Linear(4*D, 80) and nn.Linear(80, 1)
    w1 = jax.random.normal(k1, (4 * D, HIDDEN), dtype=jnp.float32) / jnp.sqrt(4.0 * D)
    b1 = jax.random.normal(k2, (1, HIDDEN), dtype=jnp.float32) * 0.01
    w2 = jax.random.normal(k3, (HIDDEN, 1), dtype=jnp.float32) / jnp.sqrt(float(HIDDEN))
    b2 = jax.random.normal(k4, (1, 1), dtype=jnp.float32) * 0.01

    out = interest_extractor(candidate_emb, user_behavior_subseq, w1, b1, w2, b2)
    out = jax.block_until_ready(out)

    ref = reference(candidate_emb, user_behavior_subseq, w1, b1, w2, b2)
    assert out.shape == (B, D)
    max_err = float(jnp.max(jnp.abs(out - ref)))
    assert jnp.allclose(out, ref, atol=1e-4, rtol=1e-4), (
        f"mismatch vs reference, max abs diff {max_err}")

    print("KERNEL_OK")
</pallas_src>

<mosaic_0001>
module attributes {stable_mosaic.version = 11 : i64} {
  func.func @interest_extractor_kernel(%arg0: i32, %arg1: memref<8x32xf32, #tpu.memory_space<vmem>>, %arg2: memref<8x16x32xf32, #tpu.memory_space<vmem>>, %arg3: memref<32x80xf32, #tpu.memory_space<vmem>>, %arg4: memref<32x80xf32, #tpu.memory_space<vmem>>, %arg5: memref<32x80xf32, #tpu.memory_space<vmem>>, %arg6: memref<1x80xf32, #tpu.memory_space<vmem>>, %arg7: memref<1x80xf32, #tpu.memory_space<vmem>>, %arg8: memref<8x32xf32, #tpu.memory_space<vmem>>) attributes {dimension_semantics = [#tpu.dimension_semantics<parallel>], iteration_bounds = array<i64: 2>, scalar_prefetch = 0 : i64, scratch_operands = 0 : i64, tpu.core_type = #tpu.core_type<tc>, window_params = [{transform_indices = @transform_0, window_bounds = array<i64: 8, 32>}, {transform_indices = @transform_1, window_bounds = array<i64: 8, 16, 32>}, {pipeline_mode = #tpu.pipeline_mode<synchronous>, transform_indices = @transform_2, window_bounds = array<i64: 32, 80>}, {pipeline_mode = #tpu.pipeline_mode<synchronous>, transform_indices = @transform_3, window_bounds = array<i64: 32, 80>}, {pipeline_mode = #tpu.pipeline_mode<synchronous>, transform_indices = @transform_4, window_bounds = array<i64: 32, 80>}, {pipeline_mode = #tpu.pipeline_mode<synchronous>, transform_indices = @transform_5, window_bounds = array<i64: 1, 80>}, {pipeline_mode = #tpu.pipeline_mode<synchronous>, transform_indices = @transform_6, window_bounds = array<i64: 1, 80>}, {transform_indices = @transform_7, window_bounds = array<i64: 8, 32>}]} {
    %c0 = arith.constant 0 : index
    %c0_0 = arith.constant 0 : index
    %0 = vector.load %arg1[%c0, %c0_0] : memref<8x32xf32, #tpu.memory_space<vmem>>, vector<8x32xf32>
    %c0_1 = arith.constant 0 : index
    %c0_2 = arith.constant 0 : index
    %c0_3 = arith.constant 0 : index
    %1 = vector.load %arg2[%c0_1, %c0_2, %c0_3] : memref<8x16x32xf32, #tpu.memory_space<vmem>>, vector<8x16x32xf32>
    %2 = vector.shape_cast %0 : vector<8x32xf32> to vector<8x1x32xf32>
    %3 = vector.broadcast %2 : vector<8x1x32xf32> to vector<8x16x32xf32>
    %4 = arith.mulf %1, %3 : vector<8x16x32xf32>
    %5 = vector.shape_cast %1 : vector<8x16x32xf32> to vector<128x32xf32>
    %6 = vector.shape_cast %4 : vector<8x16x32xf32> to vector<128x32xf32>
    %c0_4 = arith.constant 0 : index
    %c0_5 = arith.constant 0 : index
    %7 = vector.load %arg4[%c0_4, %c0_5] : memref<32x80xf32, #tpu.memory_space<vmem>>, vector<32x80xf32>
    %cst = arith.constant dense<0.000000e+00> : vector<128x80xf32>
    %8 = tpu.matmul %5, %7, %cst {dimension_numbers = #tpu.dot_dimension_numbers<[1], [0], [0], [1], [0, 0, 1, 1], [], []>} : vector<128x32xf32>, vector<32x80xf32>, vector<128x80xf32> -> vector<128x80xf32>
    %c0_6 = arith.constant 0 : index
    %c0_7 = arith.constant 0 : index
    %9 = vector.load %arg5[%c0_6, %c0_7] : memref<32x80xf32, #tpu.memory_space<vmem>>, vector<32x80xf32>
    %cst_8 = arith.constant dense<0.000000e+00> : vector<128x80xf32>
    %10 = tpu.matmul %6, %9, %cst_8 {dimension_numbers = #tpu.dot_dimension_numbers<[1], [0], [0], [1], [0, 0, 1, 1], [], []>} : vector<128x32xf32>, vector<32x80xf32>, vector<128x80xf32> -> vector<128x80xf32>
    %11 = arith.addf %8, %10 : vector<128x80xf32>
    %12 = vector.shape_cast %11 : vector<128x80xf32> to vector<8x16x80xf32>
    %c0_9 = arith.constant 0 : index
    %c0_10 = arith.constant 0 : index
    %13 = vector.load %arg3[%c0_9, %c0_10] : memref<32x80xf32, #tpu.memory_space<vmem>>, vector<32x80xf32>
    %cst_11 = arith.constant dense<0.000000e+00> : vector<8x80xf32>
    %14 = tpu.matmul %0, %13, %cst_11 {dimension_numbers = #tpu.dot_dimension_numbers<[1], [0], [0], [1], [0, 0, 1, 1], [], []>} : vector<8x32xf32>, vector<32x80xf32>, vector<8x80xf32> -> vector<8x80xf32>
    %15 = vector.shape_cast %14 : vector<8x80xf32> to vector<8x1x80xf32>
    %16 = vector.broadcast %15 : vector<8x1x80xf32> to vector<8x16x80xf32>
    %17 = arith.addf %12, %16 : vector<8x16x80xf32>
    %c0_12 = arith.constant 0 : index
    %c0_13 = arith.constant 0 : index
    %18 = vector.load %arg6[%c0_12, %c0_13] : memref<1x80xf32, #tpu.memory_space<vmem>>, vector<1x80xf32>
    %19 = vector.shape_cast %18 : vector<1x80xf32> to vector<1x1x80xf32>
    %20 = vector.broadcast %19 : vector<1x1x80xf32> to vector<8x16x80xf32>
    %21 = arith.addf %17, %20 : vector<8x16x80xf32>
    %cst_14 = arith.constant 0.000000e+00 : f32
    %22 = vector.broadcast %cst_14 : f32 to vector<8x16x80xf32>
    %23 = arith.maximumf %21, %22 : vector<8x16x80xf32>
    %c0_15 = arith.constant 0 : index
    %c0_16 = arith.constant 0 : index
    %24 = vector.load %arg7[%c0_15, %c0_16] : memref<1x80xf32, #tpu.memory_space<vmem>>, vector<1x80xf32>
    %25 = vector.shape_cast %24 : vector<1x80xf32> to vector<1x1x80xf32>
    %26 = vector.broadcast %25 : vector<1x1x80xf32> to vector<8x16x80xf32>
    %27 = arith.mulf %23, %26 : vector<8x16x80xf32>
    %cst_17 = arith.constant dense<0.000000e+00> : vector<8x16xf32>
    %28 = vector.multi_reduction <add>, %27, %cst_17 [2] : vector<8x16x80xf32> to vector<8x16xf32>
    %cst_18 = arith.constant dense<0xFF800000> : vector<8xf32>
    %29 = vector.multi_reduction <maximumf>, %28, %cst_18 [1] : vector<8x16xf32> to vector<8xf32>
    %30 = vector.shape_cast %29 : vector<8xf32> to vector<8x1xf32>
    %31 = vector.broadcast %30 : vector<8x1xf32> to vector<8x16xf32>
    %32 = arith.subf %28, %31 : vector<8x16xf32>
    %33 = math.exp %32 : vector<8x16xf32>
    %cst_19 = arith.constant dense<0.000000e+00> : vector<8xf32>
    %34 = vector.multi_reduction <add>, %33, %cst_19 [1] : vector<8x16xf32> to vector<8xf32>
    %35 = vector.shape_cast %34 : vector<8xf32> to vector<8x1xf32>
    %36 = vector.broadcast %35 : vector<8x1xf32> to vector<8x16xf32>
    %37 = arith.divf %33, %36 : vector<8x16xf32>
    %38 = vector.shape_cast %37 : vector<8x16xf32> to vector<8x1x16xf32>
    "tpu.trace_start"() <{level = 10 : i32, message = "bqk,bkd->bqd"}> : () -> ()
    %cst_20 = arith.constant dense<0.000000e+00> : vector<8x1x32xf32>
    %39 = tpu.matmul %38, %1, %cst_20 {dimension_numbers = #tpu.dot_dimension_numbers<[2], [1], [1], [2], [0, 0, 0, 1, 1, 2], [0], [0]>} : vector<8x1x16xf32>, vector<8x16x32xf32>, vector<8x1x32xf32> -> vector<8x1x32xf32>
    "tpu.trace_stop"() : () -> ()
    %40 = vector.shape_cast %39 : vector<8x1x32xf32> to vector<8x32xf32>
    %c0_21 = arith.constant 0 : index
    %c0_22 = arith.constant 0 : index
    %41 = vector.load %arg8[%c0_21, %c0_22] : memref<8x32xf32, #tpu.memory_space<vmem>>, vector<8x32xf32>
    tpu.vector_store %arg8[%c0_21, %c0_22], %40 {strides = array<i32>} : memref<8x32xf32, #tpu.memory_space<vmem>>, vector<8x32xf32>,
    return
  }
  func.func @transform_0(%arg0: i32) -> (i32, i32) {
    %c0_i32 = arith.constant 0 : i32
    %c0_i32_0 = arith.constant 0 : i32
    return %arg0, %c0_i32 : i32, i32
  }
  func.func @transform_1(%arg0: i32) -> (i32, i32, i32) {
    %c0_i32 = arith.constant 0 : i32
    %c0_i32_0 = arith.constant 0 : i32
    %c0_i32_1 = arith.constant 0 : i32
    return %arg0, %c0_i32, %c0_i32_0 : i32, i32, i32
  }
  func.func @transform_2(%arg0: i32) -> (i32, i32) {
    %c0_i32 = arith.constant 0 : i32
    %c0_i32_0 = arith.constant 0 : i32
    %c0_i32_1 = arith.constant 0 : i32
    return %c0_i32, %c0_i32_0 : i32, i32
  }
  func.func @transform_3(%arg0: i32) -> (i32, i32) {
    %c0_i32 = arith.constant 0 : i32
    %c0_i32_0 = arith.constant 0 : i32
    %c0_i32_1 = arith.constant 0 : i32
    return %c0_i32, %c0_i32_0 : i32, i32
  }
  func.func @transform_4(%arg0: i32) -> (i32, i32) {
    %c0_i32 = arith.constant 0 : i32
    %c0_i32_0 = arith.constant 0 : i32
    %c0_i32_1 = arith.constant 0 : i32
    return %c0_i32, %c0_i32_0 : i32, i32
  }
  func.func @transform_5(%arg0: i32) -> (i32, i32) {
    %c0_i32 = arith.constant 0 : i32
    %c0_i32_0 = arith.constant 0 : i32
    %c0_i32_1 = arith.constant 0 : i32
    return %c0_i32, %c0_i32_0 : i32, i32
  }
  func.func @transform_6(%arg0: i32) -> (i32, i32) {
    %c0_i32 = arith.constant 0 : i32
    %c0_i32_0 = arith.constant 0 : i32
    %c0_i32_1 = arith.constant 0 : i32
    return %c0_i32, %c0_i32_0 : i32, i32
  }
  func.func @transform_7(%arg0: i32) -> (i32, i32) {
    %c0_i32 = arith.constant 0 : i32
    %c0_i32_0 = arith.constant 0 : i32
    return %arg0, %c0_i32 : i32, i32
  }
}

</mosaic_0001>

<bundles_post_ra>
// kernel: tpu_custom_call.1
= control target key start
LH: loop header
LB: loop body
LE: loop exit
PB: predicated region body
PF: predicated region fallthrough
CT: control target
= control target key end

     0   :  { %s3927_s0 = inlined_call_operand.hbm [shape: f32[16,32], index: 0, kind: input, shape index: {}]   ;;  %s3928_s1 = inlined_call_operand.hbm [shape: f32[16,16,32], index: 1, kind: input, shape index: {}]   ;;  %s3929_s2 = inlined_call_operand.hbm [shape: f32[32,80], index: 2, kind: input, shape index: {}]   ;;  %s3930_s3 = inlined_call_operand.hbm [shape: f32[32,80], index: 3, kind: input, shape index: {}]   ;;  %s3931_s4 = inlined_call_operand.hbm [shape: f32[32,80], index: 4, kind: input, shape index: {}]   ;;  %s3932_s5 = inlined_call_operand.vmem [shape: f32[1,80], index: 5, kind: input, shape index: {}]   ;;  %s3933_s6 = inlined_call_operand.vmem [shape: f32[1,80], index: 6, kind: input, shape index: {}]   ;;  %s3934_s7 = inlined_call_operand.hbm [shape: f32[16,32], index: 7, kind: output, shape index: {}]  }
   0x1   :  { %3941 = sst [smem:[#allocation17_spill]] %s3929_s2 }
   0x2   :  { %3942 = sst [smem:[#allocation18_spill]] %s3930_s3 }
   0x3   :  { %12 = vsyncpa [#allocation3], 0 }
   0x4   :  { %14 = vsyncpa [#allocation3 + $0x1], 0 }
   0x5   :  { %15 = vsyncpa [#allocation6], 0 }
   0x6   :  { %17 = vsyncpa [#allocation6 + $0x1], 0 }
   0x7   :  { %18 = vsyncpa [#allocation9], 0 }
   0x8   :  { %19 = vsyncpa [#allocation4], 0 }
   0x9   :  { %21 = vsyncpa [#allocation4 + $0x1], 0  ;;  %s3156_s24 = smov 0   ;;  %s3158_s25 = smov 0  }
   0xa   :  { %s3160_s26 = smov 0   ;;  %s3162_s27 = smov 0  }
   0xb LB: > { %s3177_s28 = sadd.s32 4294967295, %s3102_s27   ;;  %s2473_s29 = sadd.s32 4294967294, %s3102_s27   ;;  %s3102_s27 = sphi %s3162_s27, %s3965_s27   ;;  %s3098_s26 = sphi %s3160_s26, %s3964_s26   ;;  %s3094_s25 = sphi %s3158_s25, %s3963_s25   ;;  %s3090_s24 = sphi %s3156_s24, %s3962_s24  }
   0xc   : > { %p47_p0 = scmp.ne.s32.totalorder %s3094_s25, %s3090_s24  ;;  %p3935_p1 = scmp.eq.s32.totalorder %s3177_s28, 0 }
   0xd   : > { %p202_p2 = scmp.eq.s32.totalorder %s3177_s28, 1  ;;  %p208_p3 = scmp.eq.s32.totalorder %s2473_s29, 1 }
   0xe   : > { %p3186_p4 = por %p3935_p1, %p47_p0  ;;  %p2474_p5 = scmp.ge.s32.totalorder %s3102_s27, 1 }
   0xf   : > { %p3191_p6 = por %p208_p3, %p47_p0  ;;  %p215_p7 = scmp.lt.s32.totalorder %s3102_s27, 3 }
  0x10   : > { %s3943_s30 = scalar_select %p3186_p4, 1, 0 }
  0x11   : > { %s3944_s8 = scalar_select %p3191_p6, 1, 0 }
  0x12   : > { %p3196_p8 = pnand %p2474_p5, %p215_p7  ;;  %s3104_s10 = smov [#allocation7]  }
  0x13   : > { %s227_s11 = sshll.u32 %s3104_s10, 4  ;;  %s3105_s13 = smov [#allocation8]   ;;  %s228_s11 = int_to_ptr.vmem [resolvable:$true] %s227_s11 }
  0x14   : > { %s3945_s9 = scalar_select %p3196_p8, 1, 0 }
  0x15   : > { %p2759_p9 = pneg %p3196_p8  ;;  %s240_s14 = sshll.u32 %s3105_s13, 4  ;;  %s241_s14 = int_to_ptr.vmem [resolvable:$true] %s240_s14 }
  0x16   : > { %s3106_s15 = smov [#allocation10]   ;;  %s2903_s17 = scalar_lea.vmem %s228_s11, 512 }
  0x17   : > { %p3205_p11 = pnand %p2759_p9, %p3935_p1  ;;  %s253_s16 = sshll.u32 %s3106_s15, 4  ;;  %s254_s16 = int_to_ptr.vmem [resolvable:$true] %s253_s16 }
  0x18   : > { %p2904_p13 = scmp.ne.s32.totalorder %s228_s11, %s2903_s17  ;;  %p2911_p5 = scmp.lt.s32.totalorder %s228_s11, %s228_s11 }
  0x19   : > { %p2894_p12 = pneg %p3205_p11  ;;  %p2912_p7 = scmp.lt.s32.totalorder %s2903_s17, %s2903_s17 }
  0x1b   : > { %p2906_p0 = pnand %p2904_p13, %p2894_p12  ;;  %p2913_p9 = por %p2912_p7, %p2911_p5 }
  0x1d   : > { %p2907_p3 = pneg %p2906_p0 }
  0x1f   : > { %p2914_p10 = pnand %p2913_p9, %p2907_p3 }
  0x21   : > { %2917 = shalt.err (!%p2914_p10)
}
  0x22   : > { %s3936_s18 = smov 128   ;;  %s3937_s19 = smov 8  }
  0x23   : > { %s3947_s2 = sld [smem:[#allocation17_spill]]  ;;  %s2929_s22 = scalar_lea.vmem %s241_s14, 512 }
  0x24   : > { %p2930_p13 = scmp.ne.s32.totalorder %s241_s14, %s2929_s22  ;;  %p2937_p3 = scmp.lt.s32.totalorder %s241_s14, %s241_s14 }
  0x25   : > { %p2938_p10 = scmp.lt.s32.totalorder %s2929_s22, %s2929_s22 }
  0x26   : > { %p2932_p0 = pnand %p2930_p13, %p2894_p12 }
  0x27   : > { %p2939_p7 = por %p2938_p10, %p2937_p3 }
  0x28   : > { %p2933_p5 = pneg %p2932_p0 }
  0x29   : > { %2762 = dma.hbm_to_vmem [thread:$0]  (!%p3205_p11), %s3947_s2, 512, %s228_s11, [#allocation6], %s3936_s18, %s3936_s18, %s3937_s19  }
  0x2a   : > { %p2940_p9 = pnand %p2939_p7, %p2933_p5 }
  0x2c   : > { %2943 = shalt.err (!%p2940_p9)
}
  0x2d   : > { %s3948_s3 = sld [smem:[#allocation18_spill]]  ;;  %s2955_s10 = scalar_lea.vmem %s254_s16, 512 }
  0x2e   : > { %p2956_p1 = scmp.ne.s32.totalorder %s254_s16, %s2955_s10  ;;  %p2963_p3 = scmp.lt.s32.totalorder %s254_s16, %s254_s16 }
  0x2f   : > { %p2964_p5 = scmp.lt.s32.totalorder %s2955_s10, %s2955_s10 }
  0x30   : > { %p2958_p13 = pnand %p2956_p1, %p2894_p12 }
  0x31   : > { %p2965_p10 = por %p2964_p5, %p2963_p3 }
  0x32   : > { %p2959_p0 = pneg %p2958_p13 }
  0x33   : > { %2765 = dma.hbm_to_vmem [thread:$0]  (!%p3205_p11), %s3948_s3, 512, %s241_s14, [#allocation9], %s3936_s18, %s3936_s18, %s3937_s19  }
  0x34   : > { %p2966_p7 = pnand %p2965_p10, %p2959_p0 }
  0x36   : > { %2969 = shalt.err (!%p2966_p7)
}
  0x37   : > { %2768 = dma.hbm_to_vmem [thread:$0]  (!%p3205_p11), %s3931_s4, 512, %s254_s16, [#allocation9], %s3936_s18, %s3936_s18, %s3937_s19  }
  0x38   : > { %s3245_s14 = sadd.s32 1, %s3102_s27   ;;  %s34_s15 = sadd.s32 1, %s3098_s26 }
  0x39   : > { %s31_s12 = ssub.s32 %s3102_s27, %s3245_s14  ;;  %p41_p12 = scmp.ne.s32.totalorder %s3098_s26, %s3094_s25 }
  0x3a   : > { %p32_p1 = scmp.eq.s32.totalorder %s31_s12, 0  ;;  %p42_p9 = scmp.eq.s32.totalorder %s3102_s27, 0 }
  0x3b   : > { %p2783_p13 = scmp.lt.s32.totalorder %s3102_s27, 2  ;;  %p3259_p3 = por %p202_p2, %p41_p12 }
  0x3c   : > { %s3255_s17 = scalar_select %p32_p1, %s3098_s26, %s34_s15  }
  0x3d   : > { %p43_p0 = por %p42_p9, %p41_p12  ;;  %s3264_s21 = sand.u32 1, %s3098_s26  }
  0x3e   : > { %s3949_s20 = scalar_select %p3259_p3, 1, 0 }
  0x3f   : > { %s2480_s16 = sshll.u32 %s3102_s27, 7  ;;  %s2479_s22 = sshll.u32 %s3264_s21, 3 }
  0x40   : > { %s3271_s10 = scalar_lea.hbm %s3927_s0, %s2480_s16  ;;  %s277_s11 = scalar_lea.vmem [#allocation2], %s2479_s22 }
  0x41   : > { %s284_s13 = sshll.u32 %s277_s11, 4  ;;  %p3273_p2 = pnand %p2783_p13, %p43_p0  ;;  %s285_s13 = int_to_ptr.vmem [resolvable:$true] %s284_s13 }
  0x42   : > { %s2481_s15 = sshll.u32 %s3264_s21, 7  ;;  %s274_s18 = scalar_lea.sflag [#allocation3], %s3264_s21 }
  0x43   : > { %s2970_s19 = scalar_lea.hbm %s3271_s10, 128  ;;  %p2972_p5 = pneg %p3273_p2 }
  0x44   : > { %p2971_p11 = scmp.ne.s32.totalorder %s3271_s10, %s2970_s19  ;;  %s2975_s23 = scalar_lea.hbm %s3927_s0, 256 }
  0x45   : > { %p2976_p1 = scmp.lt.s32.totalorder %s3271_s10, %s3927_s0  ;;  %p2977_p12 = scmp.lt.s32.totalorder %s2975_s23, %s2970_s19 }
  0x46   : > { %p2973_p10 = pnand %p2972_p5, %p2971_p11 }
  0x47   : > { %p2978_p9 = por %p2977_p12, %p2976_p1 }
  0x48   : > { %p2974_p7 = pneg %p2973_p10 }
  0x4a   : > { %p2979_p13 = pnand %p2978_p9, %p2974_p7 }
  0x4c   : > { %2982 = shalt.err (!%p2979_p13)
}
  0x4d   : > { %s2983_s21 = scalar_lea.vmem %s285_s13, 128  ;;  %s3109_s2 = smov [#allocation2]  }
  0x4e   : > { %p2984_p0 = scmp.ne.s32.totalorder %s285_s13, %s2983_s21  ;;  %s2988_s3 = sshll.u32 %s3109_s2, 4  ;;  %s2989_s3 = int_to_ptr.vmem [resolvable:$false] %s2988_s3 }
  0x4f   : > { %s2990_s16 = scalar_lea.vmem %s2989_s3, 256  ;;  %p2991_p10 = scmp.lt.s32.totalorder %s285_s13, %s2989_s3 }
  0x50   : > { %p2986_p6 = pnand %p2984_p0, %p2972_p5  ;;  %p2992_p3 = scmp.lt.s32.totalorder %s2990_s16, %s2983_s21 }
  0x52   : > { %p2987_p11 = pneg %p2986_p6  ;;  %p2993_p4 = por %p2992_p3, %p2991_p10 }
  0x54   : > { %p2994_p8 = pnand %p2993_p4, %p2987_p11 }
  0x56   : > { %2997 = shalt.err (!%p2994_p8)
}
  0x57   : > { %2772 = dma.hbm_to_vmem [thread:$0]  (!%p3273_p2), %s3271_s10, 128, %s285_s13, %s274_s18  }
  0x58   : > { %s295_s19 = scalar_lea.vmem [#allocation5], %s2481_s15  ;;  %s291_s23 = sand.u32 1, %s3102_s27  }
  0x59   : > { %s303_s22 = sshll.u32 %s295_s19, 4  ;;  %s2540_s2 = sshll.u32 %s3102_s27, 11  ;;  %s3300_s22 = int_to_ptr.vmem [resolvable:$true] %s303_s22 }
  0x5a   : > { %s3306_s3 = scalar_lea.hbm %s3928_s1, %s2540_s2  ;;  %s292_s21 = scalar_lea.sflag [#allocation6], %s291_s23 }
  0x5b   : > { %s2998_s16 = scalar_lea.hbm %s3306_s3, 2048  ;;  %s3003_s13 = scalar_lea.hbm %s3928_s1, 4096 }
  0x5c   : > { %p2999_p4 = scmp.ne.s32.totalorder %s3306_s3, %s2998_s16  ;;  %p3004_p3 = scmp.lt.s32.totalorder %s3306_s3, %s3928_s1 }
  0x5d   : > { %p3005_p7 = scmp.lt.s32.totalorder %s3003_s13, %s2998_s16 }
  0x5e   : > { %p3001_p6 = pnand %p2999_p4, %p2972_p5 }
  0x5f   : > { %p3006_p1 = por %p3005_p7, %p3004_p3 }
  0x60   : > { %p3002_p8 = pneg %p3001_p6 }
  0x62   : > { %p3007_p12 = pnand %p3006_p1, %p3002_p8 }
  0x64   : > { %3010 = shalt.err (!%p3007_p12)
}
  0x65   : > { %s3011_s23 = scalar_lea.vmem %s3300_s22, 2048  ;;  %s3110_s2 = smov [#allocation5]  }
  0x66   : > { %p3012_p9 = scmp.ne.s32.totalorder %s3300_s22, %s3011_s23  ;;  %s3016_s29 = sshll.u32 %s3110_s2, 4  ;;  %s3017_s29 = int_to_ptr.vmem [resolvable:$false] %s3016_s29 }
  0x67   : > { %s3018_s11 = scalar_lea.vmem %s3017_s29, 4096  ;;  %p3019_p11 = scmp.lt.s32.totalorder %s3300_s22, %s3017_s29 }
  0x68   : > { %p3014_p13 = pnand %p3012_p9, %p2972_p5  ;;  %p3020_p10 = scmp.lt.s32.totalorder %s3018_s11, %s3011_s23 }
  0x6a   : > { %p3015_p0 = pneg %p3014_p13  ;;  %p3021_p4 = por %p3020_p10, %p3019_p11 }
  0x6c   : > { %p3022_p6 = pnand %p3021_p4, %p3015_p0 }
  0x6e   : > { %3025 = shalt.err (!%p3022_p6)
}
  0x6f   : > { %s3951_s16 = smov 8   ;;  %s3952_s18 = smov 128  }
  0x70   : > { %2775 = dma.hbm_to_vmem [thread:$0]  (!%p3273_p2), %s3306_s3, 2048, %s3300_s22, %s292_s21, %s3952_s18, %s3952_s18, %s3951_s16  }
  0x71   : > { %p3953_p5 = scmp.ne.s32.totalorder %s3945_s9, 0 }
  0x72   : > { %s3336_s10 = sand.u32 (!%p3953_p5), 1, %s3094_s25   ;;  %p3954_p8 = scmp.ne.s32.totalorder (!%p3953_p5), %s3943_s30, 0 }
  0x73   : > { %315 = sbr.rel (%p3953_p5) target bundleno = 1435 (0x59b), region = 48  ;;  %s2486_s13 = sshll.u32 (!%p3953_p5), %s3336_s10, 3 }
  0x74   : > { %s318_s15 = scalar_lea.sflag (!%p3953_p5), [#allocation3], %s3336_s10  ;;  %s321_s12 = scalar_lea.vmem (!%p3953_p5), [#allocation2], %s2486_s13 }
  0x78   : > { %3069 = dma.done.wait (%p3954_p8), %s318_s15, 128  }
  0x79   : > { %3071 = vsyncadd (%p3954_p8), %s318_s15, 4294967168  ;;  %s326_s9 = sand.u32 1, %s3177_s28   ;;  %s2487_s22 = sshll.u32 %s3336_s10, 7 }
  0x7a   : > { %s327_s3 = scalar_lea.sflag [#allocation6], %s326_s9  ;;  %s3348_s21 = scalar_lea.vmem [#allocation5], %s2487_s22 }
  0x7b   : > { %3073 = dma.done.wait (%p3954_p8), %s327_s3, 2048  }
  0x7c   : > { %3075 = vsyncadd (%p3954_p8), %s327_s3, 4294965248  ;;  %p3955_p2 = scmp.eq.s32.totalorder %s3177_s28, 0 }
  0x7e   : > { %3077 = dma.done.wait (%p3955_p2), [#allocation6], 512   ;;  %p3956_p3 = pmov %p3955_p2 }
  0x7f   : > { %p3957_p7 = pmov %p3955_p2 }
  0x80   : > { %3079 = vsyncadd (%p3956_p3), [#allocation6], 4294966784 }
  0x81   : > { %3081 = dma.done.wait (%p3957_p7), [#allocation9], 1024   ;;  %p3958_p1 = pmov %p3955_p2 }
  0x82   : > { %v401_v0 = vlaneseq  ;;  %v3111_v1 = vmov 1966171168   ;;  %v509_v6 = vld [vmem:[#allocation10 + $0x18] sm:$0xff]  ;;  %v508_v8 = vld [vmem:[#allocation10 + $0x10] sm:$0xff]  ;;  %v507_v10 = vld [vmem:[#allocation10 + $0x8] sm:$0xff]  ;;  %vm510_vm0 = vcmask 261120  }
  0x83   : > { %3083 = vsyncadd (%p3958_p1), [#allocation9], 4294966272  ;;  %v399_v2 = vunpack.c.l.s4 %v3111_v1  ;;  %v505_v7 = vld [vmem:[#allocation8 + $0x18] sm:$0xff]  ;;  %2610 = vmatprep.subr.mxu0 %v509_v6  ;;  %v504_v9 = vld [vmem:[#allocation8 + $0x10] sm:$0xff]  ;;  %v3112_v29 = vmov 0.0   ;;  %vm3113_vm1 = vmmov 0  }
  0x84   : > { %v3363_v3 = vshrl.u32 %v401_v0, 7  ;;  %2642 = vmatprep.subr.mxu1 %v505_v7  ;;  %2611 = vmatpush3.msra.mxu0 %v509_v6  ;;  %v503_v11 = vld [vmem:[#allocation8 + $0x8] sm:$0xff]  ;;  %v3368_v12 = vld [vmem:[%s321_s12] sm:$0xff]  ;;  %v506_v15 = vld [vmem:[#allocation10] sm:$0xff]  ;;  %vm1141_vm2 = vcmask 654336   ;;  %vm1217_vm3 = vcmask 130112  }
  0x85   : > { %v400_v4 = vunpack.c.0.s8 %v399_v2  ;;  %2643 = vmatpush3.msra.mxu1 %v505_v7  ;;  %2612 = vmatprep.subr.mxu0 %v508_v8  ;;  %v502_v16 = vld [vmem:[#allocation8] sm:$0xff]  ;;  %v397_v17 = vcombine.high %v3368_v12, %v3368_v12  ;;  %v3382_v21 = vld [vmem:[%s3348_s21 + $0x8] sm:$0xff]  ;;  %v3387_v25 = vld [vmem:[%s3348_s21 + $0x10] sm:$0xff]  ;;  %vm1282_vm4 = vcmask 1041409   ;;  %vm1284_vm5 = vcmask 1042434   ;;  %s2536_s29 = sshll.u32 %s3177_s28, 7 }
  0x86   : > { %2644 = vmatprep.subr.mxu1 %v504_v9  ;;  %v3373_v14 = vsub.s32 0, %v3363_v3  ;;  %2613 = vmatpush3.msra.mxu0 %v508_v8  ;;  %v3379_v20 = vld [vmem:[%s3348_s21] sm:$0xff]  ;;  %v3397_v31 = vld [vmem:[%s3348_s21 + $0x18] sm:$0xff]  ;;  %v899_v38 = vld [vmem:[#allocation7 + $0x10] sm:$0xff]  ;;  %vm1286_vm6 = vcmask 1043459   ;;  %vm1288_vm7 = vcmask 1044484   ;;  %s3888_s12 = scalar_lea.hbm %s3934_s7, %s2536_s29 }
  0x87   : > { %v3366_v5 = vsub.s32 %v400_v4, %v3363_v3  ;;  %2645 = vmatpush3.msra.mxu1 %v504_v9  ;;  %2614 = vmatprep.subr.mxu0 %v507_v10  ;;  %v900_v32 = vld [vmem:[#allocation7 + $0x18] sm:$0xff]  ;;  %v384_v33 = vld [vmem:[%s3348_s21 + $0x20] sm:$0xff]  ;;  %v385_v41 = vld [vmem:[%s3348_s21 + $0x28] sm:$0xff]  ;;  %vm1290_vm8 = vcmask 1045509   ;;  %vm1292_vm9 = vcmask 1046534   ;;  %vm1294_vm10 = vcmask 1047559  }
  0x88   : > { %2646 = vmatprep.subr.mxu1 %v503_v11  ;;  %2615 = vmatpush3.msra.mxu0 %v507_v10  ;;  %v386_v44 = vld [vmem:[%s3348_s21 + $0x30] sm:$0xff]  ;;  %v898_v45 = vld [vmem:[#allocation7 + $0x8] sm:$0xff]  ;;  %v897_v47 = vld [vmem:[#allocation7] sm:$0xff]  ;;  %vm1297_vm11 = vcmask 130048   ;;  %s377_s11 = scalar_lea.vmem [#allocation11], %s2486_s13  ;;  %s2339_s28 = scalar_lea.sflag [#allocation4], %s3336_s10 }
  0x89   : > { %v404_v13 = vrot.slane %v3368_v12, %v3366_v5  ;;  %2647 = vmatpush3.msra.mxu1 %v503_v11  ;;  %2616 = vmatprep.subr.mxu0 %v506_v15  ;;  %v411_v26 = vrot.slane %v397_v17, %v3366_v5  ;;  %v387_v49 = vld [vmem:[%s3348_s21 + $0x38] sm:$0xff]  ;;  %v388_v52 = vld [vmem:[%s3348_s21 + $0x40] sm:$0xff]  ;;  %v389_v55 = vld [vmem:[%s3348_s21 + $0x48] sm:$0xff]  ;;  %s2352_s16 = sshll.u32 %s377_s11, 4  ;;  %p3959_p9 = scmp.ne.s32.totalorder %s3949_s20, 0  ;;  %s2353_s16 = int_to_ptr.vmem [resolvable:$true] %s2352_s16 }
  0x8a   : > { %2648 = vmatprep.subr.mxu1 %v502_v16  ;;  %2617 = vmatpush3.msra.mxu0 %v506_v15  ;;  %v390_v58 = vld [vmem:[%s3348_s21 + $0x50] sm:$0xff]  ;;  %v391_v61 = vld [vmem:[%s3348_s21 + $0x58] sm:$0xff]  ;;  %v392_v1 = vld [vmem:[%s3348_s21 + $0x60] sm:$0xff]  ;;  %s3026_s13 = scalar_lea.vmem %s2353_s16, 128  ;;  %s3115_s9 = smov [#allocation11]  }
  0x8b   : > { %v412_v18 = vcombine.high %v404_v13, %v404_v13  ;;  %v420_v19 = vrot.slane %v404_v13, %v3366_v5  ;;  %2649 = vmatpush3.msra.mxu1 %v502_v16  ;;  %2650 = vmatprep.mubr.msk.f32.mxu1 %vm510_vm0, %v3379_v20  ;;  %v427_v39 = vrot.slane %v411_v26, %v3366_v5  ;;  %v393_v6 = vld [vmem:[%s3348_s21 + $0x68] sm:$0xff]  ;;  %v394_v8 = vld [vmem:[%s3348_s21 + $0x70] sm:$0xff]  ;;  %v395_v11 = vld [vmem:[%s3348_s21 + $0x78] sm:$0xff]  ;;  %p3027_p12 = scmp.ne.s32.totalorder %s2353_s16, %s3026_s13  ;;  %s3030_s22 = sshll.u32 %s3115_s9, 4  ;;  %s3031_s22 = int_to_ptr.vmem [resolvable:$false] %s3030_s22 }
  0x8c   : > { %2674 = vmatprep.subr.mxu0 %v3112_v29  ;;  %2651 = vmatmul.mubr.msk.f32.vlgmr.msra.gmra.mxu1 %vm510_vm0, %v3382_v21  ;;  %v413_v43 = vcombine.high %v411_v26, %v411_v26  ;;  %s3032_s3 = scalar_lea.vmem %s3031_s22, 256  ;;  %p3033_p11 = scmp.lt.s32.totalorder %s2353_s16, %s3031_s22 }
  0x8d   : > { %v442_v22 = vcombine.high %v420_v19, %v420_v19  ;;  %v449_v23 = vrot.slane %v420_v19, %v3373_v14  ;;  %v434_v24 = vrot.slane %v412_v18, %v3366_v5  ;;  %2653 = vmatprep.mubr.msk.f32.mxu1 %vm510_vm0, %v3387_v25  ;;  %v465_v50 = vrot.slane %v427_v39, %v3373_v14  ;;  %p3028_p13 = pnand %p3027_p12, %p3959_p9  ;;  %p3034_p10 = scmp.lt.s32.totalorder %s3032_s3, %s3026_s13 }
  0x8e   : > { %v441_v51 = vrot.slane %v413_v43, %v3366_v5  ;;  %2685 = vmatprep.subr.mxu1 %v3112_v29  ;;  %v443_v57 = vcombine.high %v427_v39, %v427_v39 }
  0x8f   : > { %v486_v27 = vmul.f32 %v449_v23, %v3379_v20  ;;  %v487_v28 = vmul.f32 %v449_v23, %v3382_v21  ;;  %v453_v30 = vrot.slane %v434_v24, %v3373_v14  ;;  %v457_v34 = vrot.slane %v442_v22, %v3373_v14  ;;  %2686 = vmatpush3.msra.mxu1 %v3382_v21  ;;  %p3029_p0 = pneg %p3028_p13  ;;  %p3035_p4 = por %p3034_p10, %p3033_p11 }
  0x90   : > { %v444_v35 = vcombine.high %v434_v24, %v434_v24  ;;  %2654 = vmatmul.mubr.msk.f32.gmra.mxu1 %vm510_vm0, %v3397_v31  ;;  %v494_v54 = vmul.f32 %v465_v50, %v388_v52  ;;  %v469_v56 = vrot.slane %v441_v51, %v3373_v14  ;;  %2687 = vmatprep.subr.mxu1 %v3112_v29 }
  0x91   : > { %2618 = vmatprep.mubr.msk.f32.mxu0 %vm510_vm0, %v486_v27  ;;  %v488_v36 = vmul.f32 %v453_v30, %v3387_v25  ;;  %v489_v37 = vmul.f32 %v453_v30, %v3397_v31  ;;  %v490_v40 = vmul.f32 %v457_v34, %v384_v33  ;;  %2656 = vmatprep.mubr.msk.f32.mxu1 %vm510_vm0, %v384_v33  ;;  %p3036_p6 = pnand %p3035_p4, %p3029_p0 }
  0x92   : > { %2619 = vmatmul.mubr.msk.f32.vlgmr.msra.gmra.mxu0 %vm510_vm0, %v487_v28  ;;  %v461_v42 = vrot.slane %v444_v35, %v3373_v14  ;;  %v491_v46 = vmul.f32 %v457_v34, %v385_v41  ;;  %2688 = vmatpush3.msra.mxu1 %v3379_v20  ;;  %v495_v59 = vmul.f32 %v465_v50, %v389_v55 }
  0x93   : > { %2675 = vmatpush3.msra.mxu0 %v900_v32  ;;  %2621 = vmatprep.mubr.msk.f32.mxu0 %vm510_vm0, %v488_v36  ;;  %v496_v60 = vmul.f32 %v469_v56, %v390_v58  ;;  %v473_v62 = vrot.slane %v443_v57, %v3373_v14  ;;  %v445_v63 = vcombine.high %v441_v51, %v441_v51 }
  0x94   : > { %2676 = vmatprep.subr.mxu0 %v3112_v29  ;;  %v492_v48 = vmul.f32 %v461_v42, %v386_v44  ;;  %2657 = vmatmul.mubr.msk.f32.gmra.mxu1 %vm510_vm0, %v385_v41  ;;  %v493_v53 = vmul.f32 %v461_v42, %v387_v49  ;;  %v497_v2 = vmul.f32 %v469_v56, %v391_v61 }
  0x95   : > { %2677 = vmatpush3.msra.mxu0 %v899_v38  ;;  %2659 = vmatprep.mubr.msk.f32.mxu1 %vm510_vm0, %v386_v44  ;;  %v498_v4 = vmul.f32 %v473_v62, %v392_v1  ;;  %v477_v7 = vrot.slane %v445_v63, %v3373_v14  ;;  %v499_v9 = vmul.f32 %v473_v62, %v393_v6  ;;  %v3502_v63 = vld [vmem:[%s3932_s5] ss:$0 sm:$0xff] }
  0x96   : > { %2622 = vmatmul.mubr.msk.f32.gmra.mxu0 %vm510_vm0, %v489_v37  ;;  %2678 = vmatprep.subr.mxu0 %v3112_v29 }
  0x97   : > { %2624 = vmatprep.mubr.msk.f32.mxu0 %vm510_vm0, %v490_v40  ;;  %2679 = vmatpush3.msra.mxu0 %v898_v45  ;;  %v500_v10 = vmul.f32 %v477_v7, %v394_v8  ;;  %v501_v13 = vmul.f32 %v477_v7, %v395_v11 }
  0x98   : > { %2680 = vmatprep.subr.mxu0 %v3112_v29  ;;  %2660 = vmatmul.mubr.msk.f32.gmra.mxu1 %vm510_vm0, %v387_v49 }
  0x99   : > { %2681 = vmatpush3.msra.mxu0 %v897_v47  ;;  %2662 = vmatprep.mubr.msk.f32.mxu1 %vm510_vm0, %v388_v52 }
  0x9a   : > { %2625 = vmatmul.mubr.msk.f32.gmra.mxu0 %vm510_vm0, %v491_v46  ;;  %2692 = vmatprep.subr.mxu0 %v3112_v29 }
  0x9b   : > { %2627 = vmatprep.mubr.msk.f32.mxu0 %vm510_vm0, %v492_v48  ;;  %2699 = vmatprep.subr.mxu1 %v3112_v29 }
  0x9c   : > { %2663 = vmatmul.mubr.msk.f32.gmra.mxu1 %vm510_vm0, %v389_v55 }
  0x9d   : > { %2665 = vmatprep.mubr.msk.f32.mxu1 %vm510_vm0, %v390_v58 }
  0x9e   : > { %2628 = vmatmul.mubr.msk.f32.gmra.mxu0 %vm510_vm0, %v493_v53 }
  0x9f   : > { %2630 = vmatprep.mubr.msk.f32.mxu0 %vm510_vm0, %v494_v54 }
  0xa0   : > { %2666 = vmatmul.mubr.msk.f32.gmra.mxu1 %vm510_vm0, %v391_v61 }
  0xa1   : > { %2668 = vmatprep.mubr.msk.f32.mxu1 %vm510_vm0, %v392_v1 }
  0xa2   : > { %2631 = vmatmul.mubr.msk.f32.gmra.mxu0 %vm510_vm0, %v495_v59 }
  0xa3   : > { %2633 = vmatprep.mubr.msk.f32.mxu0 %vm510_vm0, %v496_v60 }
  0xa4   : > { %2669 = vmatmul.mubr.msk.f32.gmra.mxu1 %vm510_vm0, %v393_v6 }
  0xa5   : > { %2671 = vmatprep.mubr.msk.f32.mxu1 %vm510_vm0, %v394_v8 }
  0xa6   : > { %2634 = vmatmul.mubr.msk.f32.gmra.mxu0 %vm510_vm0, %v497_v2 }
  0xa7   : > { %2636 = vmatprep.mubr.msk.f32.mxu0 %vm510_vm0, %v498_v4 }
  0xa8   : > { %2672 = vmatmul.mubr.msk.f32.gmra.mxu1 %vm510_vm0, %v395_v11 }
  0xa9   : > { %2689 = vmatprep.mubr.msk.f32.mxu1 %vm3113_vm1, %v3112_v29 }
  0xaa   : > { %2637 = vmatmul.mubr.msk.f32.gmra.mxu0 %vm510_vm0, %v499_v9 }
  0xab   : > { %2639 = vmatprep.mubr.msk.f32.mxu0 %vm510_vm0, %v500_v10 }
  0xae   : > { %2640 = vmatmul.mubr.msk.f32.gmra.mxu0 %vm510_vm0, %v501_v13 }
  0xaf   : > { %2682 = vmatprep.mubr.msk.f32.mxu0 %vm3113_vm1, %v3112_v29 }
  0xb2   : > { %2683 = vmatmul.mubr.msk.f32.vlgmr.msra.gmra.mxu0 %vm510_vm0, %v3368_v12 }
  0xb3   : > { %2693 = vmatpush3.msra.mxu0 %v3397_v31  ;;  %2696 = vmatprep.mubr.msk.f32.mxu0 %vm3113_vm1, %v3112_v29 }
  0xb4   : > { %2694 = vmatprep.subr.mxu0 %v3112_v29 }
  0xb5   : > { %2695 = vmatpush3.msra.mxu0 %v3387_v25 }
  0xb6   : > { %2706 = vmatprep.subr.mxu0 %v3112_v29 }
 0x14c   : > { %v2652_v15 = vpop.f32.mrf.mxu1 }
 0x14e   : > { %v818_v17 = vpop.f32.mrf.mxu1 }
 0x150   : > { %v2655_v19 = vpop.f32.mrf.mxu1 }
 0x152   : > { %v2620_v16 = vpop.f32.mrf.mxu0  ;;  %v828_v22 = vpop.f32.mrf.mxu1 }
 0x153   : > { %v824_v49 = vadd.f32 %v2652_v15, %v2620_v16 }
 0x154   : > { %v625_v18 = vpop.f32.mrf.mxu0  ;;  %v2658_v24 = vpop.f32.mrf.mxu1 }
 0x155   : > { %v819_v50 = vadd.f32 %v818_v17, %v625_v18  ;;  %v3512_v18 = vld [vmem:[%s3933_s6] ss:$0 sm:$0xff] }
 0x156   : > { %v2623_v20 = vpop.f32.mrf.mxu0  ;;  %v838_v28 = vpop.f32.mrf.mxu1 }
 0x157   : > { %v834_v54 = vadd.f32 %v2655_v19, %v2623_v20 }
 0x158   : > { %v635_v21 = vpop.f32.mrf.mxu0  ;;  %v2661_v25 = vpop.f32.mrf.mxu1 }
 0x159   : > { %v829_v55 = vadd.f32 %v828_v22, %v635_v21 }
 0x15a   : > { %v2626_v12 = vpop.f32.mrf.mxu0  ;;  %v848_v34 = vpop.f32.mrf.mxu1 }
 0x15b   : > { %v844_v56 = vadd.f32 %v2658_v24, %v2626_v12 }
 0x15c   : > { %v645_v23 = vpop.f32.mrf.mxu0  ;;  %v2664_v37 = vpop.f32.mrf.mxu1 }
 0x15d   : > { %v839_v58 = vadd.f32 %v838_v28, %v645_v23 }
 0x15e   : > { %v2629_v26 = vpop.f32.mrf.mxu0  ;;  %v858_v40 = vpop.f32.mrf.mxu1 }
 0x160   : > { %v3476_v27 = vpop.f32.mrf.mxu0  ;;  %v2667_v45 = vpop.f32.mrf.mxu1 }
 0x162   : > { %v2632_v30 = vpop.f32.mrf.mxu0  ;;  %v868_v61 = vpop.f32.mrf.mxu1 }
 0x163   : > { %v864_v59 = vadd.f32 %v2664_v37, %v2632_v30  ;;  %v854_v30 = vadd.f32 %v2661_v25, %v2629_v26 }
 0x164   : > { %v665_v31 = vpop.f32.mrf.mxu0  ;;  %v2670_v17 = vpop.f32.mrf.mxu1 }
 0x165   : > { %v859_v60 = vadd.f32 %v858_v40, %v665_v31  ;;  %v849_v40 = vadd.f32 %v848_v34, %v3476_v27 }
 0x166   : > { %v3478_v32 = vpop.f32.mrf.mxu0 }
 0x167   : > { %v874_v34 = vadd.f32 %v2667_v45, %v3478_v32 }
 0x168   : > { %v3480_v33 = vpop.f32.mrf.mxu0 }
 0x16a   : > { %v3482_v35 = vpop.f32.mrf.mxu0 }
 0x16c   : > { %v3484_v36 = vpop.f32.mrf.mxu0 }
 0x16e   : > { %v3486_v38 = vpop.f32.mrf.mxu0 }
 0x170   : > { %v3488_v39 = vpop.f32.mrf.mxu0 }
 0x172   : > { %v969_v41 = vpop.f32.mrf.mxu0 }
 0x173   : > { %v974_v42 = vcombine.high %v969_v41, %v969_v41  ;;  %v981_v43 = vrot.slane %v969_v41, %v3366_v5 }
 0x174   : > { %v2684_v44 = vpop.f32.mrf.mxu0 }
 0x175   : > { %v988_v46 = vrot.slane %v974_v42, %v3366_v5  ;;  %v989_v47 = vcombine.high %v981_v43, %v981_v43  ;;  %v997_v48 = vrot.slane %v981_v43, %v3366_v5  ;;  %v878_v44 = vpop.f32.mrf.mxu1 }
 0x177   : > { %v3494_v51 = vrot.slane %v988_v46, %v3366_v5  ;;  %v1011_v52 = vrot.slane %v989_v47, %v3366_v5  ;;  %v1019_v53 = vcombine.high %v997_v48, %v997_v48  ;;  %v1026_v57 = vrot.slane %v997_v48, %v3373_v14 }
 0x178   : > { %v990_v7 = vcombine.high %v988_v46, %v988_v46 }
 0x179   : > { %v1030_v62 = vrot.slane %v1011_v52, %v3373_v14  ;;  %v1034_v1 = vrot.slane %v1019_v53, %v3373_v14  ;;  %v1042_v2 = vrot.slane %v3494_v51, %v3373_v14  ;;  %v1063_v4 = vadd.f32 %v1026_v57, %v819_v50 }
 0x17a   : > { %v1064_v6 = vadd.f32 %v1026_v57, %v824_v49  ;;  %v1021_v8 = vcombine.high %v1011_v52, %v1011_v52  ;;  %v1018_v41 = vrot.slane %v990_v7, %v3366_v5  ;;  %v1020_v26 = vcombine.high %v3494_v51, %v3494_v51  ;;  %v2673_v57 = vpop.f32.mrf.mxu1 }
 0x17b   : > { %v1065_v9 = vadd.f32 %v1030_v62, %v829_v55  ;;  %v1066_v10 = vadd.f32 %v1030_v62, %v834_v54  ;;  %v1086_v11 = vadd.f32 %v3502_v63, %v1063_v4  ;;  %v1067_v15 = vadd.f32 %v1034_v1, %v839_v58 }
 0x17c   : > { %v1087_v13 = vadd.f32 %v3502_v63, %v1064_v6  ;;  %v1068_v16 = vadd.f32 %v1034_v1, %v844_v56  ;;  %v1071_v21 = vadd.f32 %v1042_v2, %v859_v60  ;;  %v1072_v22 = vadd.f32 %v1042_v2, %v864_v59 }
 0x17d   : > { %v1088_v19 = vadd.f32 %v3502_v63, %v1065_v9  ;;  %v1089_v20 = vadd.f32 %v3502_v63, %v1066_v10  ;;  %v1102_v12 = vmax.f32 %v1086_v11, 0.0  ;;  %v1090_v24 = vadd.f32 %v3502_v63, %v1067_v15 }
 0x17e   : > { %v1103_v23 = vmax.f32 %v1087_v13, 0.0  ;;  %v1091_v28 = vadd.f32 %v3502_v63, %v1068_v16  ;;  %v1038_v43 = vrot.slane %v1021_v8, %v3373_v14  ;;  %v1094_v48 = vadd.f32 %v3502_v63, %v1071_v21  ;;  %v888_v8 = vpop.f32.mrf.mxu1 }
 0x17f   : > { %v1104_v31 = vmax.f32 %v1088_v19, 0.0  ;;  %v1105_v37 = vmax.f32 %v1089_v20, 0.0  ;;  %v1125_v42 = vmul.f32 %v3512_v18, %v1102_v12  ;;  %v1106_v47 = vmax.f32 %v1090_v24, 0.0 }
 0x180   : > { %v1095_v49 = vadd.f32 %v3502_v63, %v1072_v22  ;;  %v1126_v27 = vmul.f32 %v3512_v18, %v1103_v23  ;;  %v1107_v5 = vmax.f32 %v1091_v28, 0.0  ;;  %v869_v53 = vadd.f32 %v868_v61, %v3480_v33 }
 0x181   : > { %v1127_v46 = vmul.f32 %v3512_v18, %v1104_v31  ;;  %v1142_v25 = vsel %vm1141_vm2, %v1125_v42, 0.0  ;;  %v1128_v52 = vmul.f32 %v3512_v18, %v1105_v37  ;;  %v1022_v54 = vcombine.high %v1018_v41, %v1018_v41 }
 0x182   : > { %1143 = vadd.xlane.f32.xlu0 %v1142_v25  ;;  %v1069_v55 = vadd.f32 %v1038_v43, %v849_v40  ;;  %v1070_v56 = vadd.f32 %v1038_v43, %v854_v30  ;;  %v1129_v51 = vmul.f32 %v3512_v18, %v1106_v47  ;;  %v1110_v58 = vmax.f32 %v1094_v48, 0.0 }
 0x183   : > { %v1148_v50 = vsel %vm1141_vm2, %v1127_v46, 0.0  ;;  %v1111_v59 = vmax.f32 %v1095_v49, 0.0  ;;  %v1046_v60 = vrot.slane %v1018_v41, %v3373_v14  ;;  %v1145_v32 = vsel %vm1141_vm2, %v1126_v27, 0.0 }
 0x184   : > { %1149 = vadd.xlane.f32.xlu1 %v1148_v50  ;;  %v1130_v45 = vmul.f32 %v3512_v18, %v1107_v5  ;;  %v1092_v62 = vadd.f32 %v3502_v63, %v1069_v55  ;;  %v1050_v1 = vrot.slane %v1020_v26, %v3373_v14  ;;  %v1151_v33 = vsel %vm1141_vm2, %v1128_v52, 0.0 }
 0x185   : > { %v1093_v61 = vadd.f32 %v3502_v63, %v1070_v56  ;;  %v1073_v2 = vadd.f32 %v1046_v60, %v869_v53  ;;  %v1074_v4 = vadd.f32 %v1046_v60, %v874_v34  ;;  %v879_v6 = vadd.f32 %v878_v44, %v3484_v36 }
 0x186   : > { %1146 = vadd.xlane.f32.xlu0 %v1145_v32  ;;  %v884_v7 = vadd.f32 %v2670_v17, %v3482_v35  ;;  %v1154_v9 = vsel %vm1141_vm2, %v1129_v51, 0.0  ;;  %v1133_v10 = vmul.f32 %v3512_v18, %v1110_v58  ;;  %v1134_v11 = vmul.f32 %v3512_v18, %v1111_v59 }
 0x187   : > { %v1108_v13 = vmax.f32 %v1092_v62, 0.0  ;;  %v1096_v15 = vadd.f32 %v3502_v63, %v1073_v2  ;;  %v1075_v16 = vadd.f32 %v1050_v1, %v879_v6  ;;  %v1054_v19 = vrot.slane %v1022_v54, %v3373_v14 }
 0x188   : > { %1152 = vadd.xlane.f32.xlu1 %v1151_v33  ;;  %v1157_v20 = vsel %vm1141_vm2, %v1130_v45, 0.0  ;;  %v1109_v36 = vmax.f32 %v1093_v61, 0.0  ;;  %v1097_v21 = vadd.f32 %v3502_v63, %v1074_v4  ;;  %v1076_v35 = vadd.f32 %v1050_v1, %v884_v7 }
 0x189   : > { %v889_v17 = vadd.f32 %v888_v8, %v3488_v39  ;;  %v894_v22 = vadd.f32 %v2673_v57, %v3486_v38  ;;  %v1166_v12 = vsel %vm1141_vm2, %v1133_v10, 0.0  ;;  %v1169_v23 = vsel %vm1141_vm2, %v1134_v11, 0.0 }
 0x18a   : > { %1155 = vadd.xlane.f32.xlu0 %v1154_v9  ;;  %v1131_v24 = vmul.f32 %v3512_v18, %v1108_v13  ;;  %v1112_v28 = vmax.f32 %v1096_v15, 0.0  ;;  %v1098_v30 = vadd.f32 %v3502_v63, %v1075_v16  ;;  %v1132_v37 = vmul.f32 %v3512_v18, %v1109_v36 }
 0x18b   : > { %v1077_v31 = vadd.f32 %v1054_v19, %v889_v17  ;;  %v1113_v40 = vmax.f32 %v1097_v21, 0.0  ;;  %v1099_v41 = vadd.f32 %v3502_v63, %v1076_v35  ;;  %v1078_v39 = vadd.f32 %v1054_v19, %v894_v22 }
 0x18c   : > { %1158 = vadd.xlane.f32.xlu1 %v1157_v20  ;;  %v1160_v38 = vsel %vm1141_vm2, %v1131_v24, 0.0  ;;  %v1135_v42 = vmul.f32 %v3512_v18, %v1112_v28  ;;  %v1114_v43 = vmax.f32 %v1098_v30, 0.0  ;;  %v1163_v46 = vsel %vm1141_vm2, %v1132_v37, 0.0 }
 0x18d   : > { %v1100_v44 = vadd.f32 %v3502_v63, %v1077_v31  ;;  %v1136_v47 = vmul.f32 %v3512_v18, %v1113_v40  ;;  %v1115_v48 = vmax.f32 %v1099_v41, 0.0  ;;  %v1101_v49 = vadd.f32 %v3502_v63, %v1078_v39 }
 0x18e   : > { %1167 = vadd.xlane.f32.xlu0 %v1166_v12  ;;  %v1172_v26 = vsel %vm1141_vm2, %v1135_v42, 0.0  ;;  %v1137_v25 = vmul.f32 %v3512_v18, %v1114_v43 }
 0x18f   : > { %v1116_v27 = vmax.f32 %v1100_v44, 0.0  ;;  %v1175_v5 = vsel %vm1141_vm2, %v1136_v47, 0.0  ;;  %v1138_v34 = vmul.f32 %v3512_v18, %v1115_v48  ;;  %v1117_v50 = vmax.f32 %v1101_v49, 0.0 }
 0x190   : > { %1170 = vadd.xlane.f32.xlu1 %v1169_v23  ;;  %v1178_v52 = vsel %vm1141_vm2, %v1137_v25, 0.0 }
 0x191   : > { %v1139_v53 = vmul.f32 %v3512_v18, %v1116_v27  ;;  %v1181_v63 = vsel %vm1141_vm2, %v1138_v34, 0.0  ;;  %v1140_v54 = vmul.f32 %v3512_v18, %v1117_v50  ;;  %v1207_v18 = vand.u32 127, %v401_v0 }
 0x192   : > { %1161 = vadd.xlane.f32.xlu0 %v1160_v38  ;;  %v1308_v34 = vsub.s32 1, %v3363_v3 }
 0x193   : > { %v1184_v55 = vsel %vm1141_vm2, %v1139_v53, 0.0  ;;  %v1187_v56 = vsel %vm1141_vm2, %v1140_v54, 0.0  ;;  %v1212_v45 = vadd.s32 4294967288, %v1207_v18  ;;  %v3599_v4 = vsub.s32 %v1207_v18, %v3363_v3 }
 0x194   : > { %1164 = vadd.xlane.f32.xlu1 %v1163_v46 }
 0x195   : > { %v3592_v33 = vsub.s32 %v1212_v45, %v3363_v3  ;;  %v1328_v45 = vsub.s32 6, %v3363_v3 }
 0x196   : > { %1173 = vadd.xlane.f32.xlu0 %v1172_v26 }
 0x198   : > { %1176 = vadd.xlane.f32.xlu1 %v1175_v5  ;;  %v3114_v5 = vmov 0  }
 0x199   : > { %2830 = vset.pattern.permute.xlu0 %v3114_v5  ;;  %2829 = vset.pattern.permute.xlu1 %v3114_v5 }
 0x19a   : > { %1179 = vadd.xlane.f32.xlu0 %v1178_v52 }
 0x19c   : > { %1182 = vadd.xlane.f32.xlu1 %v1181_v63  ;;  %v1324_v63 = vsub.s32 5, %v3363_v3 }
 0x19e   : > { %1185 = vadd.xlane.f32.xlu0 %v1184_v55 }
 0x1a0   : > { %1188 = vadd.xlane.f32.xlu1 %v1187_v56  ;;  %v1312_v56 = vsub.s32 2, %v3363_v3 }
 0x20b   : > { %v3574_v57 = vpop.xlane.xlu0 %1143 }
 0x20c   : > { %v1211_v15 = vrot.slane %v3574_v57, %v3599_v4 }
 0x20d   : > { %v3576_v51 = vpop.xlane.xlu1 %1149 }
 0x20e   : > { %v1222_v7 = vrot.slane %v3576_v51, %v3599_v4 }
 0x20f   : > { %v3578_v58 = vpop.xlane.xlu0 %1146 }
 0x210   : > { %v1216_v8 = vrot.slane %v3578_v58, %v3592_v33 }
 0x211   : > { %v3580_v59 = vpop.xlane.xlu1 %1152 }
 0x212   : > { %v1226_v6 = vrot.slane %v3580_v59, %v3592_v33  ;;  %v1218_v36 = vsel %vm1217_vm3, %v1216_v8, %v1211_v15  ;;  %v1316_v15 = vsub.s32 3, %v3363_v3 }
 0x213   : > { %v3582_v60 = vpop.xlane.xlu0 %1155 }
 0x214   : > { %v1231_v11 = vrot.slane %v3582_v60, %v3599_v4  ;;  %v1227_v16 = vsel %vm1217_vm3, %v1226_v6, %v1222_v7 }
 0x215   : > { %v3584_v32 = vpop.xlane.xlu1 %1158  ;;  %v1283_v22 = vsel %vm1282_vm4, %v1227_v16, %v1218_v36 }
 0x216   : > { %v1235_v0 = vrot.slane %v3584_v32, %v3592_v33 }
 0x217   : > { %v3587_v62 = vpop.xlane.xlu0 %1167 }
 0x218   : > { %v1236_v20 = vsel %vm1217_vm3, %v1235_v0, %v1231_v11  ;;  %v1249_v31 = vrot.slane %v3587_v62, %v3599_v4 }
 0x219   : > { %v3589_v1 = vpop.xlane.xlu1 %1170  ;;  %v1285_v24 = vsel %vm1284_vm5, %v1236_v20, %v1283_v22 }
 0x21a   : > { %v1253_v12 = vrot.slane %v3589_v1, %v3592_v33 }
 0x21b   : > { %v3594_v61 = vpop.xlane.xlu0 %1161 }
 0x21c   : > { %v1240_v19 = vrot.slane %v3594_v61, %v3599_v4  ;;  %v1254_v38 = vsel %vm1217_vm3, %v1253_v12, %v1249_v31 }
 0x21d   : > { %v3596_v2 = vpop.xlane.xlu1 %1164 }
 0x21e   : > { %v1244_v9 = vrot.slane %v3596_v2, %v3592_v33 }
 0x21f   : > { %v3611_v10 = vpop.xlane.xlu0 %1173 }
 0x220   : > { %v1245_v21 = vsel %vm1217_vm3, %v1244_v9, %v1240_v19  ;;  %v1258_v28 = vrot.slane %v3611_v10, %v3599_v4 }
 0x221   : > { %v3615_v13 = vpop.xlane.xlu1 %1176  ;;  %v1287_v37 = vsel %vm1286_vm6, %v1245_v21, %v1285_v24 }
 0x222   : > { %v1262_v35 = vrot.slane %v3615_v13, %v3592_v33  ;;  %v1289_v47 = vsel %vm1288_vm7, %v1254_v38, %v1287_v37 }
 0x223   : > { %v3627_v17 = vpop.xlane.xlu0 %1179 }
 0x224   : > { %v1267_v40 = vrot.slane %v3627_v17, %v3599_v4  ;;  %v1263_v41 = vsel %vm1217_vm3, %v1262_v35, %v1258_v28 }
 0x225   : > { %v3632_v23 = vpop.xlane.xlu1 %1182  ;;  %v1291_v48 = vsel %vm1290_vm8, %v1263_v41, %v1289_v47 }
 0x226   : > { %v1271_v30 = vrot.slane %v3632_v23, %v3592_v33 }
 0x227   : > { %v1186_v39 = vpop.xlane.xlu0 %1185 }
 0x228   : > { %v1272_v43 = vsel %vm1217_vm3, %v1271_v30, %v1267_v40  ;;  %v1276_v44 = vrot.slane %v1186_v39, %v3599_v4 }
 0x229   : > { %v3646_v42 = vpop.xlane.xlu1 %1188  ;;  %v1293_v26 = vsel %vm1292_vm9, %v1272_v43, %v1291_v48 }
 0x22a   : > { %v1280_v46 = vrot.slane %v3646_v42, %v3592_v33 }
 0x22c   : > { %v1281_v49 = vsel %vm1217_vm3, %v1280_v46, %v1276_v44 }
 0x22d   : > { %v1295_v25 = vsel %vm1294_vm10, %v1281_v49, %v1293_v26 }
 0x22e   : > { %v1298_v27 = vsel %vm1297_vm11, %v1295_v25, -inf }
 0x22f   : > { %1299 = vmax.xlane.f32.xlu0 %v1298_v27 }
 0x2b8   : > { %v1300_v50 = vpop.xlane.xlu0 %1299 }
 0x2b9   : > { %v1305_v52 = vrot.slane %v1300_v50, %v3373_v14  ;;  %v1309_v53 = vrot.slane %v1300_v50, %v1308_v34  ;;  %v3670_v6 = vrot.slane %v1300_v50, %v1324_v63  ;;  %v1313_v8 = vrot.slane %v1300_v50, %v1312_v56 }
 0x2ba   : > { %v1317_v21 = vrot.slane %v1300_v50, %v1316_v15 }
 0x2bb   : > { %v1342_v54 = vsub.f32 %v3574_v57, %v1305_v52  ;;  %v1343_v55 = vsub.f32 %v3578_v58, %v1305_v52  ;;  %v1344_v18 = vsub.f32 %v3576_v51, %v1309_v53  ;;  %v1345_v9 = vsub.f32 %v3580_v59, %v1309_v53 }
 0x2bc   : > { %v1332_v58 = vsub.s32 7, %v3363_v3  ;;  %v1329_v51 = vrot.slane %v1300_v50, %v1328_v45  ;;  %v1352_v11 = vsub.f32 %v3611_v10, %v3670_v6  ;;  %v1346_v16 = vsub.f32 %v3582_v60, %v1313_v8 }
 0x2bd   : > { %v1358_v0 = vmul.f32 1.442695, %v1342_v54  ;;  %v1360_v7 = vmul.f32 1.442695, %v1343_v55  ;;  %v1362_v57 = vmul.f32 1.442695, %v1344_v18  ;;  %v1347_v35 = vsub.f32 %v3584_v32, %v1313_v8 }
 0x2be   : > { %v1364_v19 = vmul.f32 1.442695, %v1345_v9  ;;  %v1333_v59 = vrot.slane %v1300_v50, %v1332_v58  ;;  %v1354_v20 = vsub.f32 %v3627_v17, %v1329_v51  ;;  %v1378_v36 = vmul.f32 1.442695, %v1352_v11 }
 0x2bf   : > { %2832 = vpow2.f32 %v1358_v0  ;;  %v1366_v22 = vmul.f32 1.442695, %v1346_v16  ;;  %v1320_v60 = vsub.s32 4, %v3363_v3  ;;  %v1348_v24 = vsub.f32 %v3594_v61, %v1317_v21 }
 0x2c0   : > { %2834 = vpow2.f32 %v1360_v7  ;;  %v1356_v10 = vsub.f32 %v1186_v39, %v1333_v59  ;;  %v1382_v12 = vmul.f32 1.442695, %v1354_v20  ;;  %v1368_v28 = vmul.f32 1.442695, %v1347_v35 }
 0x2c1   : > { %2836 = vpow2.f32 %v1362_v57  ;;  %v1321_v32 = vrot.slane %v1300_v50, %v1320_v60  ;;  %v1349_v37 = vsub.f32 %v3596_v2, %v1317_v21  ;;  %v1370_v40 = vmul.f32 1.442695, %v1348_v24 }
 0x2c2   : > { %2838 = vpow2.f32 %v1364_v19  ;;  %v1386_v31 = vmul.f32 1.442695, %v1356_v10  ;;  %v1355_v26 = vsub.f32 %v3632_v23, %v1329_v51 }
 0x2c3   : > { %2840 = vpow2.f32 %v1378_v36  ;;  %v1350_v41 = vsub.f32 %v3587_v62, %v1321_v32  ;;  %v1372_v39 = vmul.f32 1.442695, %v1349_v37  ;;  %v1351_v44 = vsub.f32 %v3589_v1, %v1321_v32 }
 0x2c4   : > { %2842 = vpow2.f32 %v1366_v22  ;;  %v1353_v62 = vsub.f32 %v3615_v13, %v3670_v6  ;;  %v1357_v13 = vsub.f32 %v3646_v42, %v1333_v59  ;;  %v1384_v5 = vmul.f32 1.442695, %v1355_v26 }
 0x2c5   : > { %2844 = vpow2.f32 %v1382_v12  ;;  %v1374_v2 = vmul.f32 1.442695, %v1350_v41  ;;  %v1376_v48 = vmul.f32 1.442695, %v1351_v44 }
 0x2c6   : > { %2846 = vpow2.f32 %v1368_v28  ;;  %v1380_v25 = vmul.f32 1.442695, %v1353_v62  ;;  %v1388_v52 = vmul.f32 1.442695, %v1357_v13 }
 0x2c7   : > { %2848 = vpow2.f32 %v1386_v31 }
 0x2c8   : > { %2850 = vpow2.f32 %v1370_v40 }
 0x2c9   : > { %2852 = vpow2.f32 %v1372_v39 }
 0x2ca   : > { %2854 = vpow2.f32 %v1374_v2 }
 0x2cb   : > { %2856 = vpow2.f32 %v1376_v48 }
 0x2cc   : > { %v3690_v30 = vpop.eup %2832  ;;  %2858 = vpow2.f32 %v1380_v25 }
 0x2cd   : > { %v3692_v17 = vpop.eup %2834  ;;  %1407 = vperm.xlu1 %2829, %v3690_v30   ;;  %2860 = vpow2.f32 %v1384_v5 }
 0x2ce   : > { %1410 = vperm.xlu0 %2830, %v3692_v17   ;;  %v3699_v61 = vpop.eup %2836  ;;  %2862 = vpow2.f32 %v1388_v52 }
 0x2cf   : > { %v3703_v38 = vpop.eup %2838 }
 0x2d0   : > { %v3706_v43 = vpop.eup %2840 }
 0x2d1   : > { %1413 = vperm.xlu1 %2829, %v3699_v61   ;;  %v3710_v46 = vpop.eup %2842 }
 0x2d2   : > { %1437 = vperm.xlu0 %2830, %v3706_v43   ;;  %v3713_v47 = vpop.eup %2844 }
 0x2d3   : > { %v3718_v49 = vpop.eup %2846 }
 0x2d4   : > { %v3721_v1 = vpop.eup %2848 }
 0x2d5   : > { %1416 = vperm.xlu1 %2829, %v3703_v38   ;;  %v3725_v27 = vpop.eup %2850 }
 0x2d6   : > { %1443 = vperm.xlu0 %2830, %v3713_v47   ;;  %v3729_v50 = vpop.eup %2852 }
 0x2d7   : > { %v3732_v53 = vpop.eup %2854 }
 0x2d8   : > { %v3735_v23 = vpop.eup %2856 }
 0x2d9   : > { %1419 = vperm.xlu1 %2829, %v3710_v46   ;;  %v3738_v54 = vpop.eup %2858 }
 0x2da   : > { %1449 = vperm.xlu0 %2830, %v3721_v1   ;;  %v3741_v42 = vpop.eup %2860 }
 0x2db   : > { %v3744_v55 = vpop.eup %2862 }
 0x2dd   : > { %1422 = vperm.xlu1 %2829, %v3718_v49  }
 0x2e1   : > { %1425 = vperm.xlu1 %2829, %v3725_v27  }
 0x2e5   : > { %1428 = vperm.xlu1 %2829, %v3729_v50  }
 0x2e9   : > { %1431 = vperm.xlu1 %2829, %v3732_v53  }
 0x2ed   : > { %1434 = vperm.xlu1 %2829, %v3735_v23  }
 0x2f1   : > { %1440 = vperm.xlu1 %2829, %v3738_v54  }
 0x2f5   : > { %1446 = vperm.xlu1 %2829, %v3741_v42  }
 0x2f9   : > { %1452 = vperm.xlu1 %2829, %v3744_v55  }
 0x348   : > { %v1408_v18 = vpop.permute.xlu1 %1407 }
 0x349   : > { %v1411_v57 = vpop.permute.xlu0 %1410  ;;  %v1457_v22 = vrot.slane %v1408_v18, %v3599_v4 }
 0x34a   : > { %v1461_v35 = vrot.slane %v1411_v57, %v3592_v33 }
 0x34c   : > { %v1414_v6 = vpop.permute.xlu1 %1413  ;;  %v1462_v44 = vsel %vm1217_vm3, %v1461_v35, %v1457_v22 }
 0x34d   : > { %v1438_v16 = vpop.permute.xlu0 %1437  ;;  %v1466_v10 = vrot.slane %v1414_v6, %v3599_v4 }
 0x34e   : > { %v1502_v2 = vrot.slane %v1438_v16, %v3599_v4 }
 0x350   : > { %v1417_v0 = vpop.permute.xlu1 %1416 }
 0x351   : > { %v1470_v59 = vrot.slane %v1417_v0, %v3592_v33  ;;  %v1444_v20 = vpop.permute.xlu0 %1443 }
 0x352   : > { %v1511_v26 = vrot.slane %v1444_v20, %v3599_v4 }
 0x353   : > { %v1471_v31 = vsel %vm1217_vm3, %v1470_v59, %v1466_v10 }
 0x354   : > { %v1420_v7 = vpop.permute.xlu1 %1419  ;;  %v1526_v25 = vsel %vm1282_vm4, %v1471_v31, %v1462_v44 }
 0x355   : > { %v1475_v24 = vrot.slane %v1420_v7, %v3599_v4  ;;  %v1450_v13 = vpop.permute.xlu0 %1449 }
 0x358   : > { %v1423_v8 = vpop.permute.xlu1 %1422 }
 0x359   : > { %v1479_v36 = vrot.slane %v1423_v8, %v3592_v33  ;;  %v1520_v8 = vrot.slane %v1450_v13, %v3599_v4  ;;  %v2882_v13 = vld [vmem:[%s3348_s21 + $0x38] sm:$0xff] }
 0x35b   : > { %v1480_v40 = vsel %vm1217_vm3, %v1479_v36, %v1475_v24 }
 0x35c   : > { %v1426_v9 = vpop.permute.xlu1 %1425  ;;  %v1527_v52 = vsel %vm1284_vm5, %v1480_v40, %v1526_v25 }
 0x35d   : > { %v1484_v32 = vrot.slane %v1426_v9, %v3599_v4 }
 0x360   : > { %v1429_v51 = vpop.permute.xlu1 %1428 }
 0x361   : > { %v1488_v12 = vrot.slane %v1429_v51, %v3592_v33 }
 0x363   : > { %v1489_v62 = vsel %vm1217_vm3, %v1488_v12, %v1484_v32 }
 0x364   : > { %v1432_v11 = vpop.permute.xlu1 %1431  ;;  %v1528_v6 = vsel %vm1286_vm6, %v1489_v62, %v1527_v52 }
 0x365   : > { %v1493_v41 = vrot.slane %v1432_v11, %v3599_v4 }
 0x368   : > { %v1435_v19 = vpop.permute.xlu1 %1434 }
 0x369   : > { %v1497_v28 = vrot.slane %v1435_v19, %v3592_v33 }
 0x36b   : > { %v1498_v5 = vsel %vm1217_vm3, %v1497_v28, %v1493_v41 }
 0x36c   : > { %v1441_v21 = vpop.permute.xlu1 %1440  ;;  %v1529_v9 = vsel %vm1288_vm7, %v1498_v5, %v1528_v6  ;;  %v2883_v5 = vld [vmem:[%s3348_s21 + $0x30] sm:$0xff] }
 0x36d   : > { %v1506_v37 = vrot.slane %v1441_v21, %v3592_v33 }
 0x36f   : > { %v1507_v18 = vsel %vm1217_vm3, %v1506_v37, %v1502_v2  ;;  %v2880_v2 = vld [vmem:[%s3348_s21 + $0x28] sm:$0xff] }
 0x370   : > { %v1447_v39 = vpop.permute.xlu1 %1446  ;;  %v1530_v51 = vsel %vm1290_vm8, %v1507_v18, %v1529_v9  ;;  %v2885_v9 = vld [vmem:[%s3348_s21 + $0x40] sm:$0xff] }
 0x371   : > { %v1515_v48 = vrot.slane %v1447_v39, %v3592_v33 }
 0x373   : > { %v1516_v0 = vsel %vm1217_vm3, %v1515_v48, %v1511_v26 }
 0x374   : > { %v1453_v7 = vpop.permute.xlu1 %1452  ;;  %v1531_v16 = vsel %vm1292_vm9, %v1516_v0, %v1530_v51 }
 0x375   : > { %v1524_v57 = vrot.slane %v1453_v7, %v3592_v33 }
 0x377   : > { %v1525_v11 = vsel %vm1217_vm3, %v1524_v57, %v1520_v8  ;;  %v2884_v8 = vld [vmem:[%s3348_s21 + $0x48] sm:$0xff] }
 0x378   : > { %v1532_v19 = vsel %vm1294_vm10, %v1525_v11, %v1531_v16 }
 0x379   : > { %v1534_v59 = vsel %vm1297_vm11, %v1532_v19, 0.0 }
 0x37a   : > { %1535 = vadd.xlane.f32.xlu0 %v1534_v59 }
 0x403   : > { %v1536_v20 = vpop.xlane.xlu0 %1535 }
 0x404   : > { %v1557_v36 = vrot.slane %v1536_v20, %v1320_v60  ;;  %v1541_v21 = vrot.slane %v1536_v20, %v3373_v14  ;;  %v1569_v35 = vrot.slane %v1536_v20, %v1332_v58  ;;  %v1545_v22 = vrot.slane %v1536_v20, %v1308_v34 }
 0x405   : > { %v1549_v10 = vrot.slane %v1536_v20, %v1312_v56  ;;  %v1553_v34 = vrot.slane %v1536_v20, %v1316_v15 }
 0x406   : > { %2864 = vrcp.f32 %v1557_v36 }
 0x407   : > { %2866 = vrcp.f32 %v1541_v21  ;;  %v2886_v21 = vld [vmem:[%s3348_s21 + $0x58] sm:$0xff] }
 0x408   : > { %2868 = vrcp.f32 %v1569_v35 }
 0x409   : > { %2870 = vrcp.f32 %v1545_v22  ;;  %v2887_v22 = vld [vmem:[%s3348_s21 + $0x50] sm:$0xff] }
 0x40a   : > { %2872 = vrcp.f32 %v1549_v10 }
 0x40b   : > { %2874 = vrcp.f32 %v1553_v34  ;;  %v2890_v34 = vld [vmem:[%s3348_s21 + $0x78] sm:$0xff] }
 0x413   : > { %v2865_v12 = vpop.eup %2864 }
 0x414   : > { %v2867_v24 = vpop.eup %2866  ;;  %v1591_v28 = vmul.f32 %v2865_v12, %v3732_v53 }
 0x415   : > { %v2869_v60 = vpop.eup %2868  ;;  %v1579_v14 = vmul.f32 %v2867_v24, %v3690_v30  ;;  %v1580_v31 = vmul.f32 %v2867_v24, %v3692_v17  ;;  %v2889_v24 = vld [vmem:[%s3348_s21 + $0x60] sm:$0xff] }
 0x416   : > { %1961 = vperm.xlu0 %2830, %v1591_v28   ;;  %v1600_v58 = vmul.f32 %v2869_v60, %v3721_v1  ;;  %v2871_v32 = vpop.eup %2870  ;;  %v1561_v1 = vrot.slane %v1536_v20, %v1324_v63 }
 0x417   : > { %1605 = vperm.xlu1 %2829, %v1579_v14   ;;  %v1582_v56 = vmul.f32 %v2871_v32, %v3699_v61  ;;  %v1583_v53 = vmul.f32 %v2871_v32, %v3703_v38  ;;  %v2873_v30 = vpop.eup %2872  ;;  %v1565_v61 = vrot.slane %v1536_v20, %v1328_v45  ;;  %v2891_v32 = vld [vmem:[%s3348_s21 + $0x70] sm:$0xff] }
 0x418   : > { %v1585_v37 = vmul.f32 %v2873_v30, %v3710_v46  ;;  %v1586_v17 = vmul.f32 %v2873_v30, %v3718_v49  ;;  %2876 = vrcp.f32 %v1561_v1  ;;  %v2875_v15 = vpop.eup %2874  ;;  %v1592_v46 = vmul.f32 %v2865_v12, %v3735_v23  ;;  %v2888_v12 = vld [vmem:[%s3348_s21 + $0x68] sm:$0xff] }
 0x419   : > { %v1588_v40 = vmul.f32 %v2875_v15, %v3725_v27  ;;  %v1589_v38 = vmul.f32 %v2875_v15, %v3729_v50  ;;  %2878 = vrcp.f32 %v1565_v61  ;;  %v1601_v27 = vmul.f32 %v2869_v60, %v3744_v55 }
 0x41a   : > { %2228 = vperm.xlu0 %2830, %v1600_v58  }
 0x41b   : > { %1608 = vperm.xlu1 %2829, %v1580_v31  }
 0x41f   : > { %1694 = vperm.xlu1 %2829, %v1582_v56  }
 0x423   : > { %1697 = vperm.xlu1 %2829, %v1583_v53  }
 0x425   : > { %v2877_v41 = vpop.eup %2876 }
 0x426   : > { %v1594_v63 = vmul.f32 %v2877_v41, %v3706_v43  ;;  %v1595_v49 = vmul.f32 %v2877_v41, %v3738_v54  ;;  %v2879_v39 = vpop.eup %2878 }
 0x427   : > { %1783 = vperm.xlu1 %2829, %v1585_v37   ;;  %v1597_v3 = vmul.f32 %v2879_v39, %v3713_v47  ;;  %v1598_v45 = vmul.f32 %v2879_v39, %v3741_v42  ;;  %v2881_v42 = vld [vmem:[%s3348_s21 + $0x20] sm:$0xff] }
 0x42b   : > { %1786 = vperm.xlu1 %2829, %v1586_v17  }
 0x42f   : > { %1872 = vperm.xlu1 %2829, %v1588_v40  }
 0x433   : > { %1875 = vperm.xlu1 %2829, %v1589_v38  }
 0x437   : > { %1964 = vperm.xlu1 %2829, %v1592_v46  }
 0x43b   : > { %2050 = vperm.xlu1 %2829, %v1594_v63  }
 0x43f   : > { %2053 = vperm.xlu1 %2829, %v1595_v49  }
 0x443   : > { %2139 = vperm.xlu1 %2829, %v1597_v3  }
 0x447   : > { %2142 = vperm.xlu1 %2829, %v1598_v45  }
 0x44b   : > { %2231 = vperm.xlu1 %2829, %v1601_v27  }
 0x491   : > { %v1962_v16 = vpop.permute.xlu0 %1961 }
 0x492   : > { %v1606_v50 = vpop.permute.xlu1 %1605  ;;  %v1969_v20 = vrot.slane %v1962_v16, %v3599_v4 }
 0x493   : > { %v1613_v43 = vrot.slane %v1606_v50, %v3599_v4 }
 0x495   : > { %v2229_v37 = vpop.permute.xlu0 %2228 }
 0x496   : > { %v1609_v23 = vpop.permute.xlu1 %1608  ;;  %v2236_v15 = vrot.slane %v2229_v37, %v3599_v4 }
 0x497   : > { %v1617_v44 = vrot.slane %v1609_v23, %v3592_v33 }
 0x499   : > { %v1618_v54 = vsel %vm1217_vm3, %v1617_v44, %v1613_v43 }
 0x49a   : > { %2690 = vmatmul.mubr.msk.f32.vlgmr.msra.gmra.mxu1 %vm1297_vm11, %v1618_v54  ;;  %v1695_v47 = vpop.permute.xlu1 %1694 }
 0x49b   : > { %2700 = vmatpush3.msra.mxu1 %v2880_v2  ;;  %2703 = vmatprep.mubr.msk.f32.mxu1 %vm3113_vm1, %v3112_v29  ;;  %v1702_v62 = vrot.slane %v1695_v47, %v3599_v4 }
 0x49c   : > { %2701 = vmatprep.subr.mxu1 %v3112_v29 }
 0x49d   : > { %2702 = vmatpush3.msra.mxu1 %v2881_v42 }
 0x49e   : > { %v1698_v55 = vpop.permute.xlu1 %1697  ;;  %2713 = vmatprep.subr.mxu1 %v3112_v29 }
 0x49f   : > { %v1706_v48 = vrot.slane %v1698_v55, %v3592_v33 }
 0x4a1   : > { %v1707_v26 = vsel %vm1217_vm3, %v1706_v48, %v1702_v62 }
 0x4a2   : > { %2697 = vmatmul.mubr.msk.f32.vlgmr.msra.gmra.mxu0 %vm1297_vm11, %v1707_v26  ;;  %v1784_v25 = vpop.permute.xlu1 %1783 }
 0x4a3   : > { %2707 = vmatpush3.msra.mxu0 %v2882_v13  ;;  %2710 = vmatprep.mubr.msk.f32.mxu0 %vm3113_vm1, %v3112_v29  ;;  %v1791_v18 = vrot.slane %v1784_v25, %v3599_v4 }
 0x4a4   : > { %2708 = vmatprep.subr.mxu0 %v3112_v29 }
 0x4a5   : > { %2709 = vmatpush3.msra.mxu0 %v2883_v5 }
 0x4a6   : > { %v1787_v52 = vpop.permute.xlu1 %1786  ;;  %2720 = vmatprep.subr.mxu0 %v3112_v29 }
 0x4a7   : > { %v1795_v6 = vrot.slane %v1787_v52, %v3592_v33 }
 0x4a9   : > { %v1796_v0 = vsel %vm1217_vm3, %v1795_v6, %v1791_v18 }
 0x4aa   : > { %2704 = vmatmul.mubr.msk.f32.vlgmr.msra.gmra.mxu1 %vm1297_vm11, %v1796_v0  ;;  %v1873_v7 = vpop.permute.xlu1 %1872 }
 0x4ab   : > { %2714 = vmatpush3.msra.mxu1 %v2884_v8  ;;  %2717 = vmatprep.mubr.msk.f32.mxu1 %vm3113_vm1, %v3112_v29  ;;  %v1880_v51 = vrot.slane %v1873_v7, %v3599_v4 }
 0x4ac   : > { %2715 = vmatprep.subr.mxu1 %v3112_v29 }
 0x4ad   : > { %2716 = vmatpush3.msra.mxu1 %v2885_v9 }
 0x4ae   : > { %v1876_v57 = vpop.permute.xlu1 %1875  ;;  %2727 = vmatprep.subr.mxu1 %v3112_v29 }
 0x4af   : > { %v1884_v11 = vrot.slane %v1876_v57, %v3592_v33 }
 0x4b1   : > { %v1885_v19 = vsel %vm1217_vm3, %v1884_v11, %v1880_v51 }
 0x4b2   : > { %2711 = vmatmul.mubr.msk.f32.vlgmr.msra.gmra.mxu0 %vm1297_vm11, %v1885_v19  ;;  %v1965_v59 = vpop.permute.xlu1 %1964 }
 0x4b3   : > { %v1973_v36 = vrot.slane %v1965_v59, %v3592_v33  ;;  %2721 = vmatpush3.msra.mxu0 %v2886_v21  ;;  %2724 = vmatprep.mubr.msk.f32.mxu0 %vm3113_vm1, %v3112_v29 }
 0x4b4   : > { %2722 = vmatprep.subr.mxu0 %v3112_v29 }
 0x4b5   : > { %v1974_v35 = vsel %vm1217_vm3, %v1973_v36, %v1969_v20  ;;  %2723 = vmatpush3.msra.mxu0 %v2887_v22 }
 0x4b6   : > { %2718 = vmatmul.mubr.msk.f32.vlgmr.msra.gmra.mxu1 %vm1297_vm11, %v1974_v35  ;;  %v2051_v10 = vpop.permute.xlu1 %2050  ;;  %2734 = vmatprep.subr.mxu0 %v3112_v29 }
 0x4b7   : > { %2728 = vmatpush3.msra.mxu1 %v2888_v12  ;;  %2731 = vmatprep.mubr.msk.f32.mxu1 %vm3113_vm1, %v3112_v29  ;;  %v2058_v60 = vrot.slane %v2051_v10, %v3599_v4 }
 0x4b8   : > { %2729 = vmatprep.subr.mxu1 %v3112_v29 }
 0x4b9   : > { %2730 = vmatpush3.msra.mxu1 %v2889_v24 }
 0x4ba   : > { %v2054_v28 = vpop.permute.xlu1 %2053 }
 0x4bb   : > { %v2062_v14 = vrot.slane %v2054_v28, %v3592_v33 }
 0x4bd   : > { %v2063_v58 = vsel %vm1217_vm3, %v2062_v14, %v2058_v60 }
 0x4be   : > { %2725 = vmatmul.mubr.msk.f32.vlgmr.msra.gmra.mxu0 %vm1297_vm11, %v2063_v58  ;;  %v2140_v31 = vpop.permute.xlu1 %2139 }
 0x4bf   : > { %2735 = vmatpush3.msra.mxu0 %v2890_v34  ;;  %2738 = vmatprep.mubr.msk.f32.mxu0 %vm3113_vm1, %v3112_v29  ;;  %v2147_v53 = vrot.slane %v2140_v31, %v3599_v4 }
 0x4c0   : > { %2736 = vmatprep.subr.mxu0 %v3112_v29 }
 0x4c1   : > { %2737 = vmatpush3.msra.mxu0 %v2891_v32 }
 0x4c2   : > { %v2143_v56 = vpop.permute.xlu1 %2142 }
 0x4c3   : > { %v2151_v30 = vrot.slane %v2143_v56, %v3592_v33 }
 0x4c5   : > { %v2152_v1 = vsel %vm1217_vm3, %v2151_v30, %v2147_v53 }
 0x4c6   : > { %2732 = vmatmul.mubr.msk.f32.vlgmr.msra.gmra.mxu1 %vm1297_vm11, %v2152_v1  ;;  %v2232_v17 = vpop.permute.xlu1 %2231 }
 0x4c7   : > { %v2240_v40 = vrot.slane %v2232_v17, %v3592_v33 }
 0x4c9   : > { %v2241_v61 = vsel %vm1217_vm3, %v2240_v40, %v2236_v15 }
 0x4ca   : > { %2739 = vmatmul.mubr.msk.f32.vlgmr.msra.gmra.mxu0 %vm1297_vm11, %v2241_v61 }
 0x55a   : > { %v1687_v29 = vpop.f32.mrf.mxu1 }
 0x55c   : > { %v2691_v38 = vpop.f32.mrf.mxu1 }
 0x562   : > { %v1776_v46 = vpop.f32.mrf.mxu0 }
 0x563   : > { %v2322_v23 = vrot.slane %v1776_v46, 7 }
 0x564   : > { %v2698_v41 = vpop.f32.mrf.mxu0 }
 0x565   : > { %v2323_v47 = vsel %vm1282_vm4, %v2322_v23, %v1687_v29 }
 0x56a   : > { %v1865_v63 = vpop.f32.mrf.mxu1 }
 0x56b   : > { %v2324_v33 = vrot.slane %v1865_v63, 6 }
 0x56c   : > { %v2705_v49 = vpop.f32.mrf.mxu1 }
 0x56d   : > { %v2325_v42 = vsel %vm1284_vm5, %v2324_v33, %v2323_v47 }
 0x572   : > { %v1954_v39 = vpop.f32.mrf.mxu0 }
 0x573   : > { %v2326_v43 = vrot.slane %v1954_v39, 5 }
 0x574   : > { %v2712_v3 = vpop.f32.mrf.mxu0 }
 0x575   : > { %v2327_v48 = vsel %vm1286_vm6, %v2326_v43, %v2325_v42 }
 0x576   : > { %v2043_v45 = vpop.f32.mrf.mxu1 }
 0x577   : > { %v2328_v44 = vrot.slane %v2043_v45, 4 }
 0x578   : > { %v2719_v27 = vpop.f32.mrf.mxu1 }
 0x579   : > { %v2329_v26 = vsel %vm1288_vm7, %v2328_v44, %v2327_v48 }
 0x57e   : > { %v2132_v50 = vpop.f32.mrf.mxu0 }
 0x57f   : > { %v2330_v2 = vrot.slane %v2132_v50, 3 }
 0x580   : > { %v2726_v4 = vpop.f32.mrf.mxu0 }
 0x581   : > { %v2331_v13 = vsel %vm1290_vm8, %v2330_v2, %v2329_v26 }
 0x586   : > { %v2221_v54 = vpop.f32.mrf.mxu1 }
 0x587   : > { %v2332_v55 = vrot.slane %v2221_v54, 2 }
 0x588   : > { %v2733_v62 = vpop.f32.mrf.mxu1 }
 0x589   : > { %v2333_v52 = vsel %vm1292_vm9, %v2332_v55, %v2331_v13 }
 0x58a   : > { %v2310_v25 = vpop.f32.mrf.mxu0 }
 0x58b   : > { %v2334_v5 = vrot.slane %v2310_v25, 1 }
 0x58c   : > { %v2740_v18 = vpop.f32.mrf.mxu0 }
 0x58d   : > { %v2335_v6 = vsel %vm1294_vm10, %v2334_v5, %v2333_v52 }
 0x58e   : > { %2337 = vst.msk [vmem:[%s377_s11] sm:$0xff] %vm510_vm0, %v2335_v6 }
 0x58f   : > { %3039 = shalt.err (!%p3036_p6)
}
 0x590   : > { %s3040_s21 = scalar_lea.hbm %s3888_s12, 128  ;;  %s3044_s19 = scalar_lea.hbm %s3934_s7, 256 }
 0x591   : > { %p3041_p5 = scmp.ne.s32.totalorder %s3888_s12, %s3040_s21  ;;  %p3045_p3 = scmp.lt.s32.totalorder %s3888_s12, %s3934_s7 }
 0x592   : > { %p3046_p7 = scmp.lt.s32.totalorder %s3044_s19, %s3040_s21 }
 0x593   : > { %p3042_p8 = pnand %p3041_p5, %p3959_p9 }
 0x594   : > { %p3047_p1 = por %p3046_p7, %p3045_p3 }
 0x595   : > { %p3043_p2 = pneg %p3042_p8 }
 0x597   : > { %p3048_p12 = pnand %p3047_p1, %p3043_p2 }
 0x599   : > { %3051 = shalt.err (!%p3048_p12)
}
 0x59a   : > { %2757 = dma.vmem_to_hbm [thread:$0]  (%p3959_p9), %s2353_s16, 128, %s3888_s12, %s2339_s28  }
 0x59b PF: > { %s2364_s29 = sand.u32 1, %s3090_s24   ;;  %p3960_p13 = scmp.ne.s32.totalorder %s3944_s8, 0 }
 0x59c   : > { %p3961_p0 = scmp.ge.s32.totalorder %s3102_s27, 2  ;;  %s2365_s11 = scalar_lea.sflag [#allocation4], %s2364_s29 }
 0x59e   : > { %p2777_p11 = pnand %p3961_p0, %p3960_p13 }
 0x5a0   : > { %p2778_p10 = pneg %p2777_p11 }
 0x5a2   : > { %3085 = dma.done.wait (%p2778_p10), %s2365_s11, 128  }
 0x5a3   : > { %3087 = vsyncadd (%p2778_p10), %s2365_s11, 4294967168  ;;  %p24_p4 = scmp.ge.s32.totalorder %s3245_s14, 4   ;;  %s3962_s24 = smov %s3094_s25 }
 0x5a4   : > { %s3963_s25 = smov %s3098_s26  ;;  %s3964_s26 = smov %s3255_s17 }
 0x5a5   : > { %s3965_s27 = smov %s3245_s14  ;;  %26 = sbr.rel (!%p24_p4) target bundleno = 11 (0xb), region = 118 }
 0x5aa   :  { %2370 = vsyncpa [#allocation3], 1 }
 0x5ab   :  { %2372 = vsyncpa [#allocation3 + $0x1], 1 }
 0x5ac   :  { %2373 = vsyncpa [#allocation6], 1 }
 0x5ad   :  { %2375 = vsyncpa [#allocation6 + $0x1], 1 }
 0x5ae   :  { %2376 = vsyncpa [#allocation9], 1 }
 0x5af   :  { %2377 = vsyncpa [#allocation4], 1 }
 0x5b0   :  { %2379 = vsyncpa [#allocation4 + $0x1], 1 }

</bundles_post_ra>
